<compile_context>
chip_gen: v7x
topology: tpu7x:2x2x1
jax: 0.10.0
libtpu: 0.0.40
codegen_flags: <defaults>
</compile_context>

<pallas_src>
import jax
import jax.numpy as jnp
import numpy as np
from jax.experimental import pallas as pl
from jax.experimental.pallas import tpu as pltpu

KH = KW = 3  # kernel size


def _conv_band_kernel(x_ref, w_ref, b_ref, o_ref):
    # x_ref: (1, 1, TH+2, Wp*Cin)  padded input rows for this tile (incl. 2-row halo)
    # w_ref: (KH, Wp*Cin, W*Cout)  banded weights (kw taps folded into the K axis)
    # b_ref: (1, W*Cout)           bias tiled along W (f32)
    # o_ref: (1, TH, W*Cout)       lane-dense output tile
    TH = o_ref.shape[1]
    WCout = o_ref.shape[2]

    x = x_ref[0, 0]                                    # (TH+2, Wp*Cin)

    # Initialize accumulator with the broadcast bias (hoisted, done once per tile).
    acc = jnp.broadcast_to(b_ref[...].astype(jnp.float32), (TH, WCout))

    # 3 fat MXU matmuls (K = Wp*Cin) chained into one f32 accumulator.
    for kh in range(KH):
        acc = acc + jnp.dot(x[kh:kh + TH, :], w_ref[kh],
                            preferred_element_type=jnp.float32)

    o_ref[0] = acc.astype(o_ref.dtype)


def conv2d_3x3_pallas(x_nchw, weight_oihw, bias, *, row_tile=8,
                      compute_dtype=jnp.float32):
    """Equivalent of nn.Conv2d(Cin, Cout, kernel_size=3, padding=1).

    x_nchw:      (N, Cin, H, W)    float32
    weight_oihw: (Cout, Cin, 3, 3) float32 (PyTorch layout)
    bias:        (Cout,)           float32
    returns:     (N, Cout, H, W)   float32
    """
    N, Cin, H, W = x_nchw.shape
    Cout = weight_oihw.shape[0]
    Wp = W + 2

    TH = row_tile if (H % row_tile == 0) else H
    n_tiles = H // TH

    # ---- one-time layout prep (plain XLA, cheap at these sizes) ----
    # NCHW -> NHWC, zero-pad spatially, flatten (W, Cin) onto the lane axis.
    x_nhwc = jnp.transpose(x_nchw, (0, 2, 3, 1))
    x_pad = jnp.pad(x_nhwc, ((0, 0), (1, 1), (1, 1), (0, 0)))
    x_flat = x_pad.reshape(N, H + 2, Wp * Cin).astype(compute_dtype)

    # Overlapping H-row tiles (2-row halo) so each grid step gets one dense block.
    x_tiles = jnp.stack(
        [x_flat[:, t * TH: t * TH + TH + 2, :] for t in range(n_tiles)], axis=1)
    # -> (N, n_tiles, TH + 2, Wp * Cin)

    # Banded weights: band[kh, wp*Cin + ci, w*Cout + co] = W[kh, kw, ci, co]
    # where wp == w + kw (zero elsewhere).  Built once with a static indicator.
    w_hwio = jnp.transpose(weight_oihw, (2, 3, 1, 0))            # (KH, KW, Cin, Cout)
    ind = np.zeros((KW, Wp, W), dtype=np.float32)
    for kw in range(KW):
        for w in range(W):
            ind[kw, w + kw, w] = 1.0
    band = jnp.einsum('kpw,hkic->hpiwc', jnp.asarray(ind), w_hwio)
    band = band.reshape(KH, Wp * Cin, W * Cout).astype(compute_dtype)

    # Bias tiled along W so it matches the (w*Cout + co) output column layout.
    bias_row = jnp.tile(bias, W).reshape(1, W * Cout).astype(jnp.float32)

    flops = 2 * N * H * KH * (Wp * Cin) * (W * Cout)
    itemsize = np.dtype(compute_dtype).itemsize
    bytes_accessed = (x_tiles.size * itemsize + band.size * itemsize
                      + bias_row.size * 4 + N * H * W * Cout * 4)

    out = pl.pallas_call(
        _conv_band_kernel,
        out_shape=jax.ShapeDtypeStruct((N, H, W * Cout), jnp.float32),
        grid_spec=pltpu.PrefetchScalarGridSpec(
            num_scalar_prefetch=0,
            grid=(N, n_tiles),
            in_specs=[
                pl.BlockSpec((1, 1, TH + 2, Wp * Cin),
                             lambda n, t: (n, t, 0, 0)),
                pl.BlockSpec((KH, Wp * Cin, W * Cout),
                             lambda n, t: (0, 0, 0)),
                pl.BlockSpec((1, W * Cout),
                             lambda n, t: (0, 0)),
            ],
            out_specs=pl.BlockSpec((1, TH, W * Cout),
                                   lambda n, t: (n, t, 0)),
        ),
        compiler_params=pltpu.CompilerParams(
            dimension_semantics=("parallel", "parallel")),
        cost_estimate=pl.CostEstimate(flops=flops, transcendentals=0,
                                      bytes_accessed=bytes_accessed),
    )(x_tiles, band, bias_row)

    # (N, H, W*Cout) -> (N, H, W, Cout) -> NCHW to match the PyTorch module.
    out = out.reshape(N, H, W, Cout)
    return jnp.transpose(out, (0, 3, 1, 2)).astype(x_nchw.dtype)


if __name__ == "__main__":
    key = jax.random.PRNGKey(0)
    k_x, k_w, k_b = jax.random.split(key, 3)

    N, Cin, Cout, H, W = 2, 16, 32, 16, 16

    x = jax.random.normal(k_x, (N, Cin, H, W), dtype=jnp.float32)
    # Deterministic parameter init (mimics Conv2d's uniform(-1/sqrt(fan_in), ...)).
    fan_in = Cin * KH * KW
    bound = float(1.0 / np.sqrt(fan_in))
    weight = jax.random.uniform(k_w, (Cout, Cin, KH, KW),
                                minval=-bound, maxval=bound, dtype=jnp.float32)
    bias = jax.random.uniform(k_b, (Cout,),
                              minval=-bound, maxval=bound, dtype=jnp.float32)

    # f32 compute keeps the tight numerical check; pass compute_dtype=jnp.bfloat16
    # on v6e/v7x for ~2x MXU throughput (f32 accumulation is preserved in-kernel).
    out = conv2d_3x3_pallas(x, weight, bias)
    out = jax.block_until_ready(out)

    # Sanity check against XLA's native conv (same semantics as torch Conv2d).
    ref = jax.lax.conv_general_dilated(
        x, weight, window_strides=(1, 1), padding=((1, 1), (1, 1)),
        dimension_numbers=("NCHW", "OIHW", "NCHW"))
    ref = ref + bias[None, :, None, None]
    assert out.shape == (N, Cout, H, W)
    assert jnp.max(jnp.abs(out - ref)) < 1e-4

    print("KERNEL_OK")
</pallas_src>

<mosaic_0001>
module attributes {stable_mosaic.version = 11 : i64} {
  func.func @_conv_band_kernel(%arg0: i32, %arg1: i32, %arg2: memref<1x1x10x288xf32, #tpu.memory_space<vmem>>, %arg3: memref<3x288x512xf32, #tpu.memory_space<vmem>>, %arg4: memref<1x512xf32, #tpu.memory_space<vmem>>, %arg5: memref<1x8x512xf32, #tpu.memory_space<vmem>>) attributes {dimension_semantics = [#tpu.dimension_semantics<parallel>, #tpu.dimension_semantics<parallel>], iteration_bounds = array<i64: 2, 2>, scalar_prefetch = 0 : i64, scratch_operands = 0 : i64, tpu.core_type = #tpu.core_type<tc>, window_params = [{transform_indices = @transform_0, window_bounds = array<i64: 1, 1, 10, 288>}, {pipeline_mode = #tpu.pipeline_mode<synchronous>, transform_indices = @transform_1, window_bounds = array<i64: 3, 288, 512>}, {pipeline_mode = #tpu.pipeline_mode<synchronous>, transform_indices = @transform_2, window_bounds = array<i64: 1, 512>}, {transform_indices = @transform_3, window_bounds = array<i64: 1, 8, 512>}]} {
    %c0 = arith.constant 0 : index
    %c0_0 = arith.constant 0 : index
    %c0_1 = arith.constant 0 : index
    %c0_2 = arith.constant 0 : index
    %0 = vector.load %arg2[%c0, %c0_0, %c0_1, %c0_2] : memref<1x1x10x288xf32, #tpu.memory_space<vmem>>, vector<1x1x10x288xf32>
    %1 = vector.shape_cast %0 : vector<1x1x10x288xf32> to vector<10x288xf32>
    %c0_3 = arith.constant 0 : index
    %c0_4 = arith.constant 0 : index
    %2 = vector.load %arg4[%c0_3, %c0_4] : memref<1x512xf32, #tpu.memory_space<vmem>>, vector<1x512xf32>
    %3 = vector.shape_cast %2 : vector<1x512xf32> to vector<1x512xf32>
    %4 = vector.broadcast %3 : vector<1x512xf32> to vector<8x512xf32>
    %5 = vector.extract_strided_slice %1 {offsets = [0, 0], sizes = [8, 288], strides = [1, 1]} : vector<10x288xf32> to vector<8x288xf32>
    %c0_5 = arith.constant 0 : index
    %c0_6 = arith.constant 0 : index
    %c0_7 = arith.constant 0 : index
    %6 = vector.load %arg3[%c0_5, %c0_6, %c0_7] : memref<3x288x512xf32, #tpu.memory_space<vmem>>, vector<1x288x512xf32>
    %7 = vector.shape_cast %6 : vector<1x288x512xf32> to vector<288x512xf32>
    %cst = arith.constant dense<0.000000e+00> : vector<8x512xf32>
    %8 = tpu.matmul %5, %7, %cst {dimension_numbers = #tpu.dot_dimension_numbers<[1], [0], [0], [1], [0, 0, 1, 1], [], []>} : vector<8x288xf32>, vector<288x512xf32>, vector<8x512xf32> -> vector<8x512xf32>
    %9 = arith.addf %4, %8 : vector<8x512xf32>
    %10 = vector.extract_strided_slice %1 {offsets = [1, 0], sizes = [8, 288], strides = [1, 1]} : vector<10x288xf32> to vector<8x288xf32>
    %c1 = arith.constant 1 : index
    %c0_8 = arith.constant 0 : index
    %c0_9 = arith.constant 0 : index
    %11 = vector.load %arg3[%c1, %c0_8, %c0_9] : memref<3x288x512xf32, #tpu.memory_space<vmem>>, vector<1x288x512xf32>
    %12 = vector.shape_cast %11 : vector<1x288x512xf32> to vector<288x512xf32>
    %cst_10 = arith.constant dense<0.000000e+00> : vector<8x512xf32>
    %13 = tpu.matmul %10, %12, %cst_10 {dimension_numbers = #tpu.dot_dimension_numbers<[1], [0], [0], [1], [0, 0, 1, 1], [], []>} : vector<8x288xf32>, vector<288x512xf32>, vector<8x512xf32> -> vector<8x512xf32>
    %14 = arith.addf %9, %13 : vector<8x512xf32>
    %15 = vector.extract_strided_slice %1 {offsets = [2, 0], sizes = [8, 288], strides = [1, 1]} : vector<10x288xf32> to vector<8x288xf32>
    %c2 = arith.constant 2 : index
    %c0_11 = arith.constant 0 : index
    %c0_12 = arith.constant 0 : index
    %16 = vector.load %arg3[%c2, %c0_11, %c0_12] : memref<3x288x512xf32, #tpu.memory_space<vmem>>, vector<1x288x512xf32>
    %17 = vector.shape_cast %16 : vector<1x288x512xf32> to vector<288x512xf32>
    %cst_13 = arith.constant dense<0.000000e+00> : vector<8x512xf32>
    %18 = tpu.matmul %15, %17, %cst_13 {dimension_numbers = #tpu.dot_dimension_numbers<[1], [0], [0], [1], [0, 0, 1, 1], [], []>} : vector<8x288xf32>, vector<288x512xf32>, vector<8x512xf32> -> vector<8x512xf32>
    %19 = arith.addf %14, %18 : vector<8x512xf32>
    %c0_14 = arith.constant 0 : index
    %c0_15 = arith.constant 0 : index
    %c0_16 = arith.constant 0 : index
    %20 = vector.load %arg5[%c0_14, %c0_15, %c0_16] : memref<1x8x512xf32, #tpu.memory_space<vmem>>, vector<1x8x512xf32>
    %21 = vector.shape_cast %20 : vector<1x8x512xf32> to vector<8x512xf32>
    %22 = vector.shape_cast %19 : vector<8x512xf32> to vector<1x8x512xf32>
    tpu.vector_store %arg5[%c0_14, %c0_15, %c0_16], %22 {strides = array<i32>} : memref<1x8x512xf32, #tpu.memory_space<vmem>>, vector<1x8x512xf32>,
    return
  }
  func.func @transform_0(%arg0: i32, %arg1: i32) -> (i32, i32, i32, i32) {
    %c0_i32 = arith.constant 0 : i32
    %c0_i32_0 = arith.constant 0 : i32
    %c0_i32_1 = arith.constant 0 : i32
    return %arg0, %arg1, %c0_i32, %c0_i32_0 : i32, i32, i32, i32
  }
  func.func @transform_1(%arg0: i32, %arg1: i32) -> (i32, i32, i32) {
    %c0_i32 = arith.constant 0 : i32
    %c0_i32_0 = arith.constant 0 : i32
    %c0_i32_1 = arith.constant 0 : i32
    %c0_i32_2 = arith.constant 0 : i32
    return %c0_i32, %c0_i32_0, %c0_i32_1 : i32, i32, i32
  }
  func.func @transform_2(%arg0: i32, %arg1: i32) -> (i32, i32) {
    %c0_i32 = arith.constant 0 : i32
    %c0_i32_0 = arith.constant 0 : i32
    %c0_i32_1 = arith.constant 0 : i32
    return %c0_i32, %c0_i32_0 : i32, i32
  }
  func.func @transform_3(%arg0: i32, %arg1: i32) -> (i32, i32, i32) {
    %c0_i32 = arith.constant 0 : i32
    %c0_i32_0 = arith.constant 0 : i32
    return %arg0, %arg1, %c0_i32 : i32, i32, i32
  }
}

</mosaic_0001>

<bundles_post_ra>
// kernel: tpu_custom_call.1
= control target key start
LH: loop header
LB: loop body
LE: loop exit
PB: predicated region body
PF: predicated region fallthrough
CT: control target
= control target key end

     0   :  { %8 = vsyncpa [#allocation3], 0  ;;  %s2758_s0 = inlined_call_operand.vmem [shape: f32[2,2,10,288], index: 0, kind: input, shape index: {}]   ;;  %s2759_s1 = inlined_call_operand.hbm [shape: f32[3,288,512], index: 1, kind: input, shape index: {}]   ;;  %s2760_s2 = inlined_call_operand.hbm [shape: f32[1,512], index: 2, kind: input, shape index: {}]   ;;  %s2761_s3 = inlined_call_operand.hbm [shape: f32[2,16,512], index: 3, kind: output, shape index: {}]  }
   0x1   :  { %9 = vsyncpa [#allocation6], 0 }
   0x2   :  { %10 = vsyncpa [#allocation4], 0 }
   0x3   :  { %12 = vsyncpa [#allocation4 + $0x1], 0  ;;  %s2475_s12 = smov 0   ;;  %s2477_s13 = smov 0  }
   0x4   :  { %s2479_s14 = smov 0   ;;  %s2481_s15 = smov 0  }
   0x5   :  { %s2483_s16 = smov 0   ;;  %s2485_s17 = smov 0  }
   0x6   :  { %s2487_s18 = smov 0   ;;  %s2489_s19 = smov 0  }
   0x7 LB: > { %2769 = sst [smem:[#allocation11_spill]] %s2443_s18  ;;  %s1713_s20 = sadd.s32 4294967295, %s2447_s19   ;;  %s2447_s19 = sphi %s2489_s19, %s18_s19   ;;  %s2443_s18 = sphi %s2487_s18, %s2783_s18   ;;  %s2439_s17 = sphi %s2485_s17, %s2788_s17   ;;  %s2435_s16 = sphi %s2483_s16, %s2781_s16   ;;  %s2431_s15 = sphi %s2481_s15, %s2787_s15   ;;  %s2427_s14 = sphi %s2479_s14, %s2786_s14   ;;  %s2423_s13 = sphi %s2477_s13, %s2785_s13   ;;  %s2419_s12 = sphi %s2475_s12, %s2784_s12  }
   0x8   : > { %s1714_s21 = sadd.s32 4294967294, %s2447_s19   ;;  %s27_s22 = sadd.s32 1, %s2439_s17 }
   0x9   : > { %s30_s23 = sadd.s32 1, %s2443_s18  ;;  %p28_p0 = scmp.ge.s32.totalorder %s27_s22, 2 }
   0xa   : > { %s109_s24 = sadd.s32 1, %s2427_s14  ;;  %p119_p1 = scmp.ne.s32.totalorder %s2427_s14, %s2423_s13 }
   0xb   : > { %p120_p2 = scmp.eq.s32.totalorder %s1713_s20, 3  ;;  %s2790_s22 = smov (%p28_p0, %s27_s22), 0 }
   0xc   : > { %2770 = sst [smem:[#allocation12_spill]] %s2790_s22  ;;  %s2792_s23 = smov (!%p28_p0, %s30_s23), %s2443_s18 }
   0xd   : > { %s105_s25 = ssub.s32 %s2439_s17, %s2790_s22  ;;  %p2527_p3 = por %p120_p2, %p119_p1 }
   0xe   : > { %p32_p4 = scmp.ge.s32.totalorder %s2792_s23, 2  ;;  %p125_p5 = scmp.ne.s32.totalorder %s2423_s13, %s2419_s12 }
   0xf   : > { %s2771_s26 = scalar_select %p2527_p3, 1, 0 }
  0x10   : > { %p126_p6 = scmp.eq.s32.totalorder %s1714_s21, 3  ;;  %p1715_p7 = scmp.ge.s32.totalorder %s2447_s19, 1 }
  0x11   : > { %s2794_s23 = smov (%p32_p4, %s2792_s23), 0  ;;  %p133_p9 = scmp.lt.s32.totalorder %s2447_s19, 5 }
  0x12   : > { %2772 = sst [smem:[#allocation13_spill]] %s2794_s23  ;;  %p2536_p8 = por %p126_p6, %p125_p5 }
  0x13   : > { %s104_s28 = ssub.s32 %s2443_s18, %s2794_s23  ;;  %p2543_p10 = pnand %p1715_p7, %p133_p9 }
  0x14   : > { %s2773_s27 = scalar_select %p2536_p8, 1, 0 }
  0x15   : > { %s106_s29 = sor.u32 %s105_s25, %s104_s28  ;;  %p2547_p12 = scmp.eq.s32.totalorder %s1713_s20, 0 }
  0x16   : > { %s2774_s30 = scalar_select %p2543_p10, 1, 0 }
  0x17   : > { %p107_p11 = scmp.eq.s32.totalorder %s106_s29, 0  ;;  %p2204_p13 = pneg %p2543_p10 }
  0x18   : > { %s2775_s4 = scalar_select %p2547_p12, 1, 0 }
  0x19   : > { %s2554_s5 = scalar_select %p107_p11, %s2427_s14, %s109_s24  }
  0x1a   : > { %s2449_s6 = smov [#allocation2]   ;;  %p2558_p0 = pnand %p2547_p12, %p2204_p13 }
  0x1b   : > { %s145_s7 = sshll.u32 %s2449_s6, 4  ;;  %s2289_s11 = scalar_lea.hbm %s2759_s1, 55296  ;;  %s146_s7 = int_to_ptr.vmem [resolvable:$true] %s145_s7 }
  0x1c   : > { %p2290_p1 = scmp.ne.s32.totalorder %s2759_s1, %s2289_s11  ;;  %p2291_p2 = pneg %p2558_p0 }
  0x1d   : > { %p2296_p6 = scmp.lt.u32.totalorder %s2289_s11, %s2759_s1 }
  0x1e   : > { %p2292_p4 = pnand %p2291_p2, %p2290_p1 }
  0x20   : > { %p2293_p5 = pneg %p2292_p4 }
  0x22   : > { %p2298_p7 = pnand %p2296_p6, %p2293_p5 }
  0x24   : > { %2301 = shalt.err (!%p2298_p7)
}
  0x25   : > { %s2302_s28 = scalar_lea.vmem %s146_s7, 55296  ;;  %p2310_p8 = scmp.lt.s32.totalorder %s146_s7, %s146_s7 }
  0x26   : > { %p2303_p9 = scmp.ne.s32.totalorder %s146_s7, %s2302_s28  ;;  %p2311_p3 = scmp.lt.s32.totalorder %s2302_s28, %s2302_s28 }
  0x28   : > { %p2305_p11 = pnand %p2303_p9, %p2291_p2  ;;  %p2312_p12 = por %p2311_p3, %p2310_p8 }
  0x2a   : > { %p2306_p13 = pneg %p2305_p11 }
  0x2c   : > { %p2313_p10 = pnand %p2312_p12, %p2306_p13 }
  0x2e   : > { %2316 = shalt.err (!%p2313_p10)
}
  0x2f   : > { %s2450_s29 = smov 512   ;;  %s2451_s6 = smov 32  }
  0x30   : > { %2207 = dma.hbm_to_vmem [thread:$0]  (!%p2558_p0), %s2759_s1, 55296, %s146_s7, [#allocation3], %s2450_s29, %s2450_s29, %s2451_s6  }
  0x31   : > { %s2452_s11 = smov [#allocation5]   ;;  %s2317_s25 = scalar_lea.hbm %s2760_s2, 64 }
  0x32   : > { %s159_s20 = sshll.u32 %s2452_s11, 4  ;;  %p2318_p3 = scmp.ne.s32.totalorder %s2760_s2, %s2317_s25  ;;  %s160_s20 = int_to_ptr.vmem [resolvable:$true] %s159_s20 }
  0x33   : > { %p2324_p12 = scmp.lt.u32.totalorder %s2317_s25, %s2760_s2 }
  0x34   : > { %p2320_p8 = pnand %p2318_p3, %p2291_p2 }
  0x36   : > { %p2321_p10 = pneg %p2320_p8 }
  0x38   : > { %p2326_p1 = pnand %p2324_p12, %p2321_p10 }
  0x3a   : > { %2329 = shalt.err (!%p2326_p1)
}
  0x3b   : > { %s2330_s7 = scalar_lea.vmem %s160_s20, 64  ;;  %p2338_p7 = scmp.lt.s32.totalorder %s160_s20, %s160_s20 }
  0x3c   : > { %p2331_p4 = scmp.ne.s32.totalorder %s160_s20, %s2330_s7  ;;  %p2339_p9 = scmp.lt.s32.totalorder %s2330_s7, %s2330_s7 }
  0x3e   : > { %p2333_p5 = pnand %p2331_p4, %p2291_p2  ;;  %p2340_p11 = por %p2339_p9, %p2338_p7 }
  0x40   : > { %p2334_p6 = pneg %p2333_p5 }
  0x42   : > { %p2341_p13 = pnand %p2340_p11, %p2334_p6 }
  0x44   : > { %2344 = shalt.err (!%p2341_p13)
}
  0x45   : > { %2210 = dma.hbm_to_vmem [thread:$0]  (!%p2558_p0), %s2760_s2, 64, %s160_s20, [#allocation6]  }
  0x46   : > { %p2777_p3 = scmp.ne.s32.totalorder %s2774_s30, 0 }
  0x47   : > { %p2778_p8 = scmp.ne.s32.totalorder (!%p2777_p3), %s2775_s4, 0 }
  0x48   : > { %184 = sbr.rel (%p2777_p3) target bundleno = 532 (0x214), region = 32 }
  0x4f   : > { %2406 = dma.done.wait (%p2778_p8), [#allocation3], 55296  }
  0x50   : > { %2408 = vsyncadd (%p2778_p8), [#allocation3], 4294912000 }
  0x51   : > { %2410 = dma.done.wait (%p2778_p8), [#allocation6], 64  }
  0x52   : > { %2412 = vsyncadd (%p2778_p8), [#allocation6], 4294967232  ;;  %v254_v0 = vld [vmem:[#allocation2 + $0x8] sm:$0xff]  ;;  %v256_v2 = vld [vmem:[#allocation2 + $0x18] sm:$0xff]  ;;  %p216_p0 = scmp.lt.s32.totalorder %s2435_s16, 1  ;;  %p218_p2 = scmp.lt.s32.totalorder %s2431_s15, 1 }
  0x53   : > { %v258_v1 = vld [vmem:[#allocation2 + $0x28] sm:$0xff]  ;;  %v260_v4 = vld [vmem:[#allocation2 + $0x38] sm:$0xff]  ;;  %v253_v5 = vld [vmem:[#allocation2] sm:$0xff]  ;;  %vm397_vm0 = vcmask 261120   ;;  %vm839_vm1 = vcmask 1046528   ;;  %vm1286_vm2 = vcmask 1045504  }
  0x54   : > { %v1736_v3 = vpack.c.bf16 %v258_v1, %v254_v0  ;;  %v257_v6 = vld [vmem:[#allocation2 + $0x20] sm:$0xff]  ;;  %v1808_v7 = vpack.c.bf16 %v260_v4, %v256_v2  ;;  %v255_v9 = vld [vmem:[#allocation2 + $0x10] sm:$0xff]  ;;  %v262_v11 = vld [vmem:[#allocation2 + $0x48] sm:$0xff]  ;;  %s2619_s18 = scalar_select %p216_p0, %s2435_s16, 1 }
  0x55   : > { %v1738_v8 = vpack.c.bf16 %v257_v6, %v253_v5  ;;  %v259_v10 = vld [vmem:[#allocation2 + $0x30] sm:$0xff]  ;;  %v266_v13 = vld [vmem:[#allocation2 + $0x68] sm:$0xff]  ;;  %v264_v14 = vld [vmem:[#allocation2 + $0x58] sm:$0xff]  ;;  %s2624_s22 = scalar_select %p218_p2, %s2431_s15, 1 }
  0x56   : > { %1737 = vmatprep.subr.bf16.mxu0 %v1736_v3  ;;  %v1810_v12 = vpack.c.bf16 %v259_v10, %v255_v9  ;;  %v268_v15 = vld [vmem:[#allocation2 + $0x78] sm:$0xff]  ;;  %1809 = vmatprep.subr.bf16.mxu1 %v1808_v7  ;;  %v1740_v16 = vpack.c.bf16 %v266_v13, %v262_v11  ;;  %v261_v18 = vld [vmem:[#allocation2 + $0x40] sm:$0xff]  ;;  %v263_v20 = vld [vmem:[#allocation2 + $0x50] sm:$0xff]  ;;  %s2193_s30 = smul.u32 12, %s2619_s18  ;;  %s213_s20 = sand.u32 1, %s2423_s13  }
  0x57   : > { %1739 = vmatpush1.bf16.msra.mxu0 %v1738_v8  ;;  %v1812_v17 = vpack.c.bf16 %v268_v15, %v264_v14  ;;  %v265_v19 = vld [vmem:[#allocation2 + $0x60] sm:$0xff]  ;;  %v267_v22 = vld [vmem:[#allocation2 + $0x70] sm:$0xff]  ;;  %v270_v23 = vld [vmem:[#allocation2 + $0x88] sm:$0xff]  ;;  %s2192_s4 = smul.u32 6, %s2624_s22  ;;  %s1722_s21 = sshll.u32 %s213_s20, 5 }
  0x58   : > { %1811 = vmatpush1.bf16.msra.mxu1 %v1810_v12  ;;  %v1742_v21 = vpack.c.bf16 %v265_v19, %v261_v18  ;;  %v274_v24 = vld [vmem:[#allocation2 + $0xa8] sm:$0xff]  ;;  %1741 = vmatprep.subr.bf16.mxu0 %v1740_v16  ;;  %v1814_v25 = vpack.c.bf16 %v267_v22, %v263_v20  ;;  %v272_v27 = vld [vmem:[#allocation2 + $0x98] sm:$0xff]  ;;  %v269_v29 = vld [vmem:[#allocation2 + $0x80] sm:$0xff]  ;;  %s1731_s24 = sshll.u32 %s2431_s15, 2  ;;  %s1732_s25 = sshll.u32 %s2435_s16, 3 }
  0x59   : > { %1813 = vmatprep.subr.bf16.mxu1 %v1812_v17  ;;  %v1744_v26 = vpack.c.bf16 %v274_v24, %v270_v23  ;;  %v276_v28 = vld [vmem:[#allocation2 + $0xb8] sm:$0xff]  ;;  %v273_v31 = vld [vmem:[#allocation2 + $0xa0] sm:$0xff]  ;;  %v271_v32 = vld [vmem:[#allocation2 + $0x90] sm:$0xff]  ;;  %s222_s8 = sadd.s32 %s2193_s30, %s2192_s4  ;;  %s1605_s28 = sadd.s32 %s1732_s25, %s1731_s24 }
  0x5a   : > { %v1816_v30 = vpack.c.bf16 %v276_v28, %v272_v27  ;;  %v275_v33 = vld [vmem:[#allocation2 + $0xb0] sm:$0xff]  ;;  %v1746_v34 = vpack.c.bf16 %v273_v31, %v269_v29  ;;  %v278_v35 = vld [vmem:[#allocation2 + $0xc8] sm:$0xff]  ;;  %v280_v37 = vld [vmem:[#allocation2 + $0xd8] sm:$0xff]  ;;  %s1723_s6 = sshll.u32 %s222_s8, 3  ;;  %s1733_s7 = sshll.u32 %s1605_s28, 7 }
  0x5b   : > { %1743 = vmatpush1.bf16.msra.mxu0 %v1742_v21  ;;  %v282_v36 = vld [vmem:[#allocation2 + $0xe8] sm:$0xff]  ;;  %v1818_v38 = vpack.c.bf16 %v275_v33, %v271_v32  ;;  %v284_v40 = vld [vmem:[#allocation2 + $0xf8] sm:$0xff]  ;;  %v277_v41 = vld [vmem:[#allocation2 + $0xc0] sm:$0xff]  ;;  %s2631_s11 = scalar_lea.vmem %s2758_s0, %s1723_s6  ;;  %s215_s23 = scalar_lea.vmem [#allocation7], %s1722_s21 }
  0x5c   : > { %1815 = vmatpush1.bf16.msra.mxu1 %v1814_v25  ;;  %1745 = vmatprep.subr.bf16.mxu0 %v1744_v26  ;;  %v1748_v39 = vpack.c.bf16 %v282_v36, %v278_v35  ;;  %v281_v42 = vld [vmem:[#allocation2 + $0xe0] sm:$0xff]  ;;  %v1820_v43 = vpack.c.bf16 %v284_v40, %v280_v37  ;;  %v279_v44 = vld [vmem:[#allocation2 + $0xd0] sm:$0xff]  ;;  %v286_v46 = vld [vmem:[#allocation2 + $0x108] sm:$0xff]  ;;  %s1609_s29 = sshll.u32 %s215_s23, 4  ;;  %s2703_s18 = scalar_lea.hbm %s2761_s3, %s1733_s7  ;;  %s2705_s29 = int_to_ptr.vmem [resolvable:$true] %s1609_s29 }
  0x5d   : > { %1817 = vmatprep.subr.bf16.mxu1 %v1816_v30  ;;  %v283_v45 = vld [vmem:[#allocation2 + $0xf0] sm:$0xff]  ;;  %v290_v47 = vld [vmem:[#allocation2 + $0x128] sm:$0xff]  ;;  %v288_v48 = vld [vmem:[#allocation2 + $0x118] sm:$0xff]  ;;  %v1750_v50 = vpack.c.bf16 %v281_v42, %v277_v41  ;;  %s1593_s22 = scalar_lea.sflag [#allocation4], %s213_s20  ;;  %s2345_s30 = scalar_lea.vmem %s2705_s29, 512 }
  0x5e   : > { %v292_v49 = vld [vmem:[#allocation2 + $0x138] sm:$0xff]  ;;  %v1822_v51 = vpack.c.bf16 %v283_v45, %v279_v44  ;;  %v1752_v52 = vpack.c.bf16 %v290_v47, %v286_v46  ;;  %v285_v53 = vld [vmem:[#allocation2 + $0x100] sm:$0xff]  ;;  %v287_v55 = vld [vmem:[#allocation2 + $0x110] sm:$0xff]  ;;  %p2346_p10 = scmp.ne.s32.totalorder %s2705_s29, %s2345_s30  ;;  %p2779_p12 = scmp.ne.s32.totalorder %s2771_s26, 0 }
  0x5f   : > { %1747 = vmatpush1.bf16.msra.mxu0 %v1746_v34  ;;  %v289_v54 = vld [vmem:[#allocation2 + $0x120] sm:$0xff]  ;;  %v1824_v56 = vpack.c.bf16 %v292_v49, %v288_v48  ;;  %v291_v57 = vld [vmem:[#allocation2 + $0x130] sm:$0xff]  ;;  %v294_v58 = vld [vmem:[#allocation2 + $0x148] sm:$0xff]  ;;  %s2454_s4 = smov [#allocation7]  }
  0x60   : > { %1819 = vmatpush1.bf16.msra.mxu1 %v1818_v38  ;;  %1749 = vmatprep.subr.bf16.mxu0 %v1748_v39  ;;  %v298_v59 = vld [vmem:[#allocation2 + $0x168] sm:$0xff]  ;;  %v296_v60 = vld [vmem:[#allocation2 + $0x158] sm:$0xff]  ;;  %v1754_v62 = vpack.c.bf16 %v289_v54, %v285_v53  ;;  %v1826_v63 = vpack.c.bf16 %v291_v57, %v287_v55  ;;  %v293_v1 = vld [vmem:[#allocation2 + $0x140] sm:$0xff]  ;;  %p2347_p1 = pnand %p2346_p10, %p2779_p12  ;;  %s2349_s8 = sshll.u32 %s2454_s4, 4  ;;  %s2350_s8 = int_to_ptr.vmem [resolvable:$false] %s2349_s8 }
  0x61   : > { %1821 = vmatprep.subr.bf16.mxu1 %v1820_v43  ;;  %v300_v61 = vld [vmem:[#allocation2 + $0x178] sm:$0xff]  ;;  %v1756_v0 = vpack.c.bf16 %v298_v59, %v294_v58  ;;  %v297_v2 = vld [vmem:[#allocation2 + $0x160] sm:$0xff]  ;;  %v295_v3 = vld [vmem:[#allocation2 + $0x150] sm:$0xff]  ;;  %s2351_s6 = scalar_lea.vmem %s2350_s8, 1024  ;;  %p2352_p5 = scmp.lt.s32.totalorder %s2705_s29, %s2350_s8 }
  0x62   : > { %v1828_v4 = vpack.c.bf16 %v300_v61, %v296_v60  ;;  %v299_v5 = vld [vmem:[#allocation2 + $0x170] sm:$0xff]  ;;  %v302_v6 = vld [vmem:[#allocation2 + $0x188] sm:$0xff]  ;;  %v304_v8 = vld [vmem:[#allocation2 + $0x198] sm:$0xff]  ;;  %v1758_v10 = vpack.c.bf16 %v297_v2, %v293_v1  ;;  %p2348_p4 = pneg %p2347_p1  ;;  %p2353_p6 = scmp.lt.s32.totalorder %s2351_s6, %s2345_s30 }
  0x63   : > { %1751 = vmatpush1.bf16.msra.mxu0 %v1750_v50  ;;  %v306_v7 = vld [vmem:[#allocation2 + $0x1a8] sm:$0xff]  ;;  %v308_v9 = vld [vmem:[#allocation2 + $0x1b8] sm:$0xff]  ;;  %v1830_v11 = vpack.c.bf16 %v299_v5, %v295_v3  ;;  %v301_v13 = vld [vmem:[#allocation2 + $0x180] sm:$0xff] }
  0x64   : > { %1823 = vmatpush1.bf16.msra.mxu1 %v1822_v51  ;;  %1753 = vmatprep.subr.bf16.mxu0 %v1752_v52  ;;  %v1760_v12 = vpack.c.bf16 %v306_v7, %v302_v6  ;;  %v305_v14 = vld [vmem:[#allocation2 + $0x1a0] sm:$0xff]  ;;  %v303_v15 = vld [vmem:[#allocation2 + $0x190] sm:$0xff]  ;;  %v1832_v16 = vpack.c.bf16 %v308_v9, %v304_v8  ;;  %v310_v18 = vld [vmem:[#allocation2 + $0x1c8] sm:$0xff]  ;;  %p2354_p7 = por %p2353_p6, %p2352_p5 }
  0x65   : > { %1825 = vmatprep.subr.bf16.mxu1 %v1824_v56  ;;  %v307_v17 = vld [vmem:[#allocation2 + $0x1b0] sm:$0xff]  ;;  %v314_v19 = vld [vmem:[#allocation2 + $0x1e8] sm:$0xff]  ;;  %v312_v20 = vld [vmem:[#allocation2 + $0x1d8] sm:$0xff]  ;;  %v1762_v22 = vpack.c.bf16 %v305_v14, %v301_v13 }
  0x66   : > { %v316_v21 = vld [vmem:[#allocation2 + $0x1f8] sm:$0xff]  ;;  %v1834_v23 = vpack.c.bf16 %v307_v17, %v303_v15  ;;  %v1764_v24 = vpack.c.bf16 %v314_v19, %v310_v18  ;;  %v309_v25 = vld [vmem:[#allocation2 + $0x1c0] sm:$0xff]  ;;  %v311_v27 = vld [vmem:[#allocation2 + $0x1d0] sm:$0xff]  ;;  %p2355_p9 = pnand %p2354_p7, %p2348_p4 }
  0x67   : > { %1755 = vmatpush1.bf16.msra.mxu0 %v1754_v62  ;;  %v313_v26 = vld [vmem:[#allocation2 + $0x1e0] sm:$0xff]  ;;  %v1836_v28 = vpack.c.bf16 %v316_v21, %v312_v20  ;;  %v315_v29 = vld [vmem:[#allocation2 + $0x1f0] sm:$0xff]  ;;  %v318_v30 = vld [vmem:[#allocation2 + $0x208] sm:$0xff] }
  0x68   : > { %1827 = vmatpush1.bf16.msra.mxu1 %v1826_v63  ;;  %1757 = vmatprep.subr.bf16.mxu0 %v1756_v0  ;;  %v322_v31 = vld [vmem:[#allocation2 + $0x228] sm:$0xff]  ;;  %v320_v32 = vld [vmem:[#allocation2 + $0x218] sm:$0xff]  ;;  %v1766_v34 = vpack.c.bf16 %v313_v26, %v309_v25  ;;  %v1838_v35 = vpack.c.bf16 %v315_v29, %v311_v27  ;;  %v317_v37 = vld [vmem:[#allocation2 + $0x200] sm:$0xff] }
  0x69   : > { %1829 = vmatprep.subr.bf16.mxu1 %v1828_v4  ;;  %v324_v33 = vld [vmem:[#allocation2 + $0x238] sm:$0xff]  ;;  %v1768_v36 = vpack.c.bf16 %v322_v31, %v318_v30  ;;  %v321_v38 = vld [vmem:[#allocation2 + $0x220] sm:$0xff]  ;;  %v319_v39 = vld [vmem:[#allocation2 + $0x210] sm:$0xff] }
  0x6a   : > { %v1840_v40 = vpack.c.bf16 %v324_v33, %v320_v32  ;;  %v323_v41 = vld [vmem:[#allocation2 + $0x230] sm:$0xff]  ;;  %v326_v42 = vld [vmem:[#allocation2 + $0x248] sm:$0xff]  ;;  %v328_v44 = vld [vmem:[#allocation2 + $0x258] sm:$0xff]  ;;  %v1770_v46 = vpack.c.bf16 %v321_v38, %v317_v37 }
  0x6b   : > { %1759 = vmatpush1.bf16.msra.mxu0 %v1758_v10  ;;  %v330_v43 = vld [vmem:[#allocation2 + $0x268] sm:$0xff]  ;;  %v332_v45 = vld [vmem:[#allocation2 + $0x278] sm:$0xff]  ;;  %v1842_v47 = vpack.c.bf16 %v323_v41, %v319_v39  ;;  %v325_v49 = vld [vmem:[#allocation2 + $0x240] sm:$0xff] }
  0x6c   : > { %1831 = vmatpush1.bf16.msra.mxu1 %v1830_v11  ;;  %1761 = vmatprep.subr.bf16.mxu0 %v1760_v12  ;;  %v1772_v48 = vpack.c.bf16 %v330_v43, %v326_v42  ;;  %v329_v50 = vld [vmem:[#allocation2 + $0x260] sm:$0xff]  ;;  %v327_v51 = vld [vmem:[#allocation2 + $0x250] sm:$0xff]  ;;  %v1844_v52 = vpack.c.bf16 %v332_v45, %v328_v44  ;;  %v334_v54 = vld [vmem:[#allocation2 + $0x288] sm:$0xff] }
  0x6d   : > { %1833 = vmatprep.subr.bf16.mxu1 %v1832_v16  ;;  %v331_v53 = vld [vmem:[#allocation2 + $0x270] sm:$0xff]  ;;  %v338_v55 = vld [vmem:[#allocation2 + $0x2a8] sm:$0xff]  ;;  %v336_v56 = vld [vmem:[#allocation2 + $0x298] sm:$0xff]  ;;  %v1774_v58 = vpack.c.bf16 %v329_v50, %v325_v49 }
  0x6e   : > { %v340_v57 = vld [vmem:[#allocation2 + $0x2b8] sm:$0xff]  ;;  %v1846_v59 = vpack.c.bf16 %v331_v53, %v327_v51  ;;  %v1776_v60 = vpack.c.bf16 %v338_v55, %v334_v54  ;;  %v333_v61 = vld [vmem:[#allocation2 + $0x280] sm:$0xff]  ;;  %v335_v63 = vld [vmem:[#allocation2 + $0x290] sm:$0xff] }
  0x6f   : > { %1763 = vmatpush1.bf16.msra.mxu0 %v1762_v22  ;;  %v337_v62 = vld [vmem:[#allocation2 + $0x2a0] sm:$0xff]  ;;  %v1848_v0 = vpack.c.bf16 %v340_v57, %v336_v56  ;;  %v339_v1 = vld [vmem:[#allocation2 + $0x2b0] sm:$0xff]  ;;  %v342_v2 = vld [vmem:[#allocation2 + $0x2c8] sm:$0xff] }
  0x70   : > { %1835 = vmatpush1.bf16.msra.mxu1 %v1834_v23  ;;  %1765 = vmatprep.subr.bf16.mxu0 %v1764_v24  ;;  %v346_v3 = vld [vmem:[#allocation2 + $0x2e8] sm:$0xff]  ;;  %v344_v4 = vld [vmem:[#allocation2 + $0x2d8] sm:$0xff]  ;;  %v1778_v6 = vpack.c.bf16 %v337_v62, %v333_v61  ;;  %v341_v7 = vld [vmem:[#allocation2 + $0x2c0] sm:$0xff]  ;;  %v1850_v8 = vpack.c.bf16 %v339_v1, %v335_v63 }
  0x71   : > { %1837 = vmatprep.subr.bf16.mxu1 %v1836_v28  ;;  %v348_v5 = vld [vmem:[#allocation2 + $0x2f8] sm:$0xff]  ;;  %v1780_v9 = vpack.c.bf16 %v346_v3, %v342_v2  ;;  %v345_v10 = vld [vmem:[#allocation2 + $0x2e0] sm:$0xff]  ;;  %v343_v11 = vld [vmem:[#allocation2 + $0x2d0] sm:$0xff] }
  0x72   : > { %v347_v12 = vld [vmem:[#allocation2 + $0x2f0] sm:$0xff]  ;;  %v1852_v13 = vpack.c.bf16 %v348_v5, %v344_v4  ;;  %v350_v14 = vld [vmem:[#allocation2 + $0x308] sm:$0xff]  ;;  %v352_v17 = vld [vmem:[#allocation2 + $0x318] sm:$0xff]  ;;  %v1782_v19 = vpack.c.bf16 %v345_v10, %v341_v7 }
  0x73   : > { %1767 = vmatpush1.bf16.msra.mxu0 %v1766_v34  ;;  %v354_v15 = vld [vmem:[#allocation2 + $0x328] sm:$0xff]  ;;  %v356_v18 = vld [vmem:[#allocation2 + $0x338] sm:$0xff]  ;;  %v1854_v20 = vpack.c.bf16 %v347_v12, %v343_v11  ;;  %v349_v22 = vld [vmem:[#allocation2 + $0x300] sm:$0xff] }
  0x74   : > { %1839 = vmatpush1.bf16.msra.mxu1 %v1838_v35  ;;  %1769 = vmatprep.subr.bf16.mxu0 %v1768_v36  ;;  %v2634_v16 = vld [vmem:[%s2631_s11 + $0x8] sm:$0xff]  ;;  %v1784_v21 = vpack.c.bf16 %v354_v15, %v350_v14  ;;  %v353_v23 = vld [vmem:[#allocation2 + $0x320] sm:$0xff]  ;;  %v351_v24 = vld [vmem:[#allocation2 + $0x310] sm:$0xff]  ;;  %v1856_v25 = vpack.c.bf16 %v356_v18, %v352_v17 }
  0x75   : > { %1841 = vmatprep.subr.bf16.mxu1 %v1840_v40  ;;  %465 = vmatprep.mubr.f32.mxu0 %v2634_v16  ;;  %v355_v26 = vld [vmem:[#allocation2 + $0x330] sm:$0xff]  ;;  %v358_v27 = vld [vmem:[#allocation2 + $0x348] sm:$0xff]  ;;  %v360_v29 = vld [vmem:[#allocation2 + $0x358] sm:$0xff]  ;;  %v1786_v31 = vpack.c.bf16 %v353_v23, %v349_v22 }
  0x76   : > { %607 = vmatprep.mubr.f32.mxu1 %v2634_v16  ;;  %v362_v28 = vld [vmem:[#allocation2 + $0x368] sm:$0xff]  ;;  %v364_v30 = vld [vmem:[#allocation2 + $0x378] sm:$0xff]  ;;  %v1858_v32 = vpack.c.bf16 %v355_v26, %v351_v24  ;;  %v357_v34 = vld [vmem:[#allocation2 + $0x340] sm:$0xff] }
  0x77   : > { %1771 = vmatpush1.bf16.msra.mxu0 %v1770_v46  ;;  %v1788_v33 = vpack.c.bf16 %v362_v28, %v358_v27  ;;  %v361_v35 = vld [vmem:[#allocation2 + $0x360] sm:$0xff]  ;;  %v359_v36 = vld [vmem:[#allocation2 + $0x350] sm:$0xff]  ;;  %v1860_v37 = vpack.c.bf16 %v364_v30, %v360_v29  ;;  %v366_v39 = vld [vmem:[#allocation2 + $0x388] sm:$0xff] }
  0x78   : > { %1843 = vmatpush1.bf16.msra.mxu1 %v1842_v47  ;;  %1773 = vmatprep.subr.bf16.mxu0 %v1772_v48  ;;  %v363_v38 = vld [vmem:[#allocation2 + $0x370] sm:$0xff]  ;;  %v370_v40 = vld [vmem:[#allocation2 + $0x3a8] sm:$0xff]  ;;  %v368_v41 = vld [vmem:[#allocation2 + $0x398] sm:$0xff]  ;;  %v1790_v43 = vpack.c.bf16 %v361_v35, %v357_v34  ;;  %v2453_v35 = vmov 0.0  }
  0x79   : > { %1845 = vmatprep.subr.bf16.mxu1 %v1844_v52  ;;  %v372_v42 = vld [vmem:[#allocation2 + $0x3b8] sm:$0xff]  ;;  %v1862_v44 = vpack.c.bf16 %v363_v38, %v359_v36  ;;  %v1792_v45 = vpack.c.bf16 %v370_v40, %v366_v39  ;;  %v365_v46 = vld [vmem:[#allocation2 + $0x380] sm:$0xff]  ;;  %v367_v48 = vld [vmem:[#allocation2 + $0x390] sm:$0xff] }
  0x7a   : > { %v369_v47 = vld [vmem:[#allocation2 + $0x3a0] sm:$0xff]  ;;  %v1864_v49 = vpack.c.bf16 %v372_v42, %v368_v41  ;;  %v371_v50 = vld [vmem:[#allocation2 + $0x3b0] sm:$0xff]  ;;  %v374_v51 = vld [vmem:[#allocation2 + $0x3c8] sm:$0xff] }
  0x7b   : > { %1775 = vmatpush1.bf16.msra.mxu0 %v1774_v58  ;;  %v378_v52 = vld [vmem:[#allocation2 + $0x3e8] sm:$0xff]  ;;  %v376_v53 = vld [vmem:[#allocation2 + $0x3d8] sm:$0xff]  ;;  %v1794_v55 = vpack.c.bf16 %v369_v47, %v365_v46  ;;  %v1866_v56 = vpack.c.bf16 %v371_v50, %v367_v48  ;;  %v373_v58 = vld [vmem:[#allocation2 + $0x3c0] sm:$0xff] }
  0x7c   : > { %1847 = vmatpush1.bf16.msra.mxu1 %v1846_v59  ;;  %1777 = vmatprep.subr.bf16.mxu0 %v1776_v60  ;;  %v380_v54 = vld [vmem:[#allocation2 + $0x3f8] sm:$0xff]  ;;  %v1796_v57 = vpack.c.bf16 %v378_v52, %v374_v51  ;;  %v377_v59 = vld [vmem:[#allocation2 + $0x3e0] sm:$0xff]  ;;  %v375_v60 = vld [vmem:[#allocation2 + $0x3d0] sm:$0xff] }
  0x7d   : > { %1849 = vmatprep.subr.bf16.mxu1 %v1848_v0  ;;  %v1868_v61 = vpack.c.bf16 %v380_v54, %v376_v53  ;;  %v379_v62 = vld [vmem:[#allocation2 + $0x3f0] sm:$0xff]  ;;  %v382_v63 = vld [vmem:[#allocation2 + $0x408] sm:$0xff]  ;;  %v384_v1 = vld [vmem:[#allocation2 + $0x418] sm:$0xff]  ;;  %v1798_v3 = vpack.c.bf16 %v377_v59, %v373_v58 }
  0x7e   : > { %v386_v0 = vld [vmem:[#allocation2 + $0x428] sm:$0xff]  ;;  %v388_v2 = vld [vmem:[#allocation2 + $0x438] sm:$0xff]  ;;  %v1870_v4 = vpack.c.bf16 %v379_v62, %v375_v60  ;;  %v385_v7 = vld [vmem:[#allocation2 + $0x420] sm:$0xff] }
  0x7f   : > { %1779 = vmatpush1.bf16.msra.mxu0 %v1778_v6  ;;  %v1800_v5 = vpack.c.bf16 %v386_v0, %v382_v63  ;;  %v381_v6 = vld [vmem:[#allocation2 + $0x400] sm:$0xff]  ;;  %v387_v10 = vld [vmem:[#allocation2 + $0x430] sm:$0xff]  ;;  %v390_v11 = vld [vmem:[#allocation2 + $0x448] sm:$0xff] }
  0x80   : > { %1851 = vmatpush1.bf16.msra.mxu1 %v1850_v8  ;;  %1781 = vmatprep.subr.bf16.mxu0 %v1780_v9  ;;  %v383_v8 = vld [vmem:[#allocation2 + $0x410] sm:$0xff]  ;;  %v1872_v9 = vpack.c.bf16 %v388_v2, %v384_v1  ;;  %v394_v12 = vld [vmem:[#allocation2 + $0x468] sm:$0xff]  ;;  %v396_v14 = vld [vmem:[#allocation2 + $0x478] sm:$0xff]  ;;  %v1802_v17 = vpack.c.bf16 %v385_v7, %v381_v6 }
  0x81   : > { %1853 = vmatprep.subr.bf16.mxu1 %v1852_v13  ;;  %v392_v13 = vld [vmem:[#allocation2 + $0x458] sm:$0xff]  ;;  %v2639_v15 = vld [vmem:[%s2631_s11] sm:$0xff]  ;;  %v1874_v18 = vpack.c.bf16 %v387_v10, %v383_v8  ;;  %v391_v22 = vld [vmem:[#allocation2 + $0x450] sm:$0xff] }
  0x82   : > { %v1876_v23 = vpack.c.bf16 %v396_v14, %v392_v13  ;;  %v395_v24 = vld [vmem:[#allocation2 + $0x470] sm:$0xff]  ;;  %v695_v26 = vld [vmem:[#allocation2 + $0x4a8] sm:$0xff]  ;;  %v693_v27 = vld [vmem:[#allocation2 + $0x498] sm:$0xff] }
  0x83   : > { %1783 = vmatpush1.bf16.msra.mxu0 %v1782_v19  ;;  %v1804_v19 = vpack.c.bf16 %v394_v12, %v390_v11  ;;  %v697_v28 = vld [vmem:[#allocation2 + $0x4b8] sm:$0xff]  ;;  %v1878_v30 = vpack.c.bf16 %v395_v24, %v391_v22  ;;  %v692_v34 = vld [vmem:[#allocation2 + $0x490] sm:$0xff]  ;;  %v699_v38 = vld [vmem:[#allocation2 + $0x4c8] sm:$0xff] }
  0x84   : > { %1855 = vmatpush1.bf16.msra.mxu1 %v1854_v20  ;;  %1785 = vmatprep.subr.bf16.mxu0 %v1784_v21  ;;  %v389_v20 = vld [vmem:[#allocation2 + $0x440] sm:$0xff]  ;;  %v1952_v36 = vpack.c.bf16 %v697_v28, %v693_v27  ;;  %v703_v39 = vld [vmem:[#allocation2 + $0x4e8] sm:$0xff]  ;;  %v701_v40 = vld [vmem:[#allocation2 + $0x4d8] sm:$0xff] }
  0x85   : > { %1857 = vmatprep.subr.bf16.mxu1 %v1856_v25  ;;  %v393_v21 = vld [vmem:[#allocation2 + $0x460] sm:$0xff]  ;;  %v691_v25 = vld [vmem:[#allocation2 + $0x488] sm:$0xff]  ;;  %v705_v41 = vld [vmem:[#allocation2 + $0x4f8] sm:$0xff] }
  0x86   : > { %v1806_v29 = vpack.c.bf16 %v393_v21, %v389_v20  ;;  %v2646_v42 = vld [vmem:[%s2631_s11 + $0x10] sm:$0xff]  ;;  %v698_v46 = vld [vmem:[#allocation2 + $0x4c0] sm:$0xff]  ;;  %v707_v51 = vld [vmem:[#allocation2 + $0x508] sm:$0xff] }
  0x87   : > { %1787 = vmatpush1.bf16.msra.mxu0 %v1786_v31  ;;  %v1880_v31 = vpack.c.bf16 %v695_v26, %v691_v25  ;;  %v702_v47 = vld [vmem:[#allocation2 + $0x4e0] sm:$0xff]  ;;  %v700_v48 = vld [vmem:[#allocation2 + $0x4d0] sm:$0xff]  ;;  %v711_v52 = vld [vmem:[#allocation2 + $0x528] sm:$0xff] }
  0x88   : > { %1859 = vmatpush1.bf16.msra.mxu1 %v1858_v32  ;;  %1789 = vmatprep.subr.bf16.mxu0 %v1788_v33  ;;  %v690_v32 = vld [vmem:[#allocation2 + $0x480] sm:$0xff]  ;;  %v704_v50 = vld [vmem:[#allocation2 + $0x4f0] sm:$0xff]  ;;  %v709_v53 = vld [vmem:[#allocation2 + $0x518] sm:$0xff] }
  0x89   : > { %1861 = vmatprep.subr.bf16.mxu1 %v1860_v37  ;;  %v694_v33 = vld [vmem:[#allocation2 + $0x4a0] sm:$0xff]  ;;  %v696_v37 = vld [vmem:[#allocation2 + $0x4b0] sm:$0xff]  ;;  %v713_v54 = vld [vmem:[#allocation2 + $0x538] sm:$0xff] }
  0x8a   : > { %v706_v58 = vld [vmem:[#allocation2 + $0x500] sm:$0xff]  ;;  %v708_v60 = vld [vmem:[#allocation2 + $0x510] sm:$0xff]  ;;  %v715_v63 = vld [vmem:[#allocation2 + $0x548] sm:$0xff] }
  0x8b   : > { %1791 = vmatpush1.bf16.msra.mxu0 %v1790_v43  ;;  %v1882_v43 = vpack.c.bf16 %v694_v33, %v690_v32  ;;  %v710_v59 = vld [vmem:[#allocation2 + $0x520] sm:$0xff]  ;;  %v712_v62 = vld [vmem:[#allocation2 + $0x530] sm:$0xff]  ;;  %v719_v0 = vld [vmem:[#allocation2 + $0x568] sm:$0xff] }
  0x8c   : > { %1863 = vmatpush1.bf16.msra.mxu1 %v1862_v44  ;;  %1793 = vmatprep.subr.bf16.mxu0 %v1792_v45  ;;  %v1954_v44 = vpack.c.bf16 %v696_v37, %v692_v34  ;;  %v1884_v45 = vpack.c.bf16 %v703_v39, %v699_v38  ;;  %v717_v1 = vld [vmem:[#allocation2 + $0x558] sm:$0xff]  ;;  %v714_v6 = vld [vmem:[#allocation2 + $0x540] sm:$0xff]  ;;  %v716_v8 = vld [vmem:[#allocation2 + $0x550] sm:$0xff] }
  0x8d   : > { %1865 = vmatprep.subr.bf16.mxu1 %v1864_v49  ;;  %v1956_v49 = vpack.c.bf16 %v705_v41, %v701_v40  ;;  %v721_v2 = vld [vmem:[#allocation2 + $0x578] sm:$0xff]  ;;  %v718_v7 = vld [vmem:[#allocation2 + $0x560] sm:$0xff]  ;;  %v720_v10 = vld [vmem:[#allocation2 + $0x570] sm:$0xff]  ;;  %v843_v40 = vrot.slane %v2634_v16, 1 }
  0x8e   : > { %v723_v11 = vld [vmem:[#allocation2 + $0x588] sm:$0xff]  ;;  %v725_v13 = vld [vmem:[#allocation2 + $0x598] sm:$0xff]  ;;  %v722_v20 = vld [vmem:[#allocation2 + $0x580] sm:$0xff] }
  0x8f   : > { %1795 = vmatpush1.bf16.msra.mxu0 %v1794_v55  ;;  %v1886_v55 = vpack.c.bf16 %v702_v47, %v698_v46  ;;  %v727_v12 = vld [vmem:[#allocation2 + $0x5a8] sm:$0xff]  ;;  %v729_v14 = vld [vmem:[#allocation2 + $0x5b8] sm:$0xff]  ;;  %v726_v21 = vld [vmem:[#allocation2 + $0x5a0] sm:$0xff] }
  0x90   : > { %1867 = vmatpush1.bf16.msra.mxu1 %v1866_v56  ;;  %1797 = vmatprep.subr.bf16.mxu0 %v1796_v57  ;;  %v1958_v56 = vpack.c.bf16 %v704_v50, %v700_v48  ;;  %v1888_v57 = vpack.c.bf16 %v711_v52, %v707_v51  ;;  %v724_v22 = vld [vmem:[#allocation2 + $0x590] sm:$0xff]  ;;  %v731_v25 = vld [vmem:[#allocation2 + $0x5c8] sm:$0xff]  ;;  %v733_v27 = vld [vmem:[#allocation2 + $0x5d8] sm:$0xff] }
  0x91   : > { %1869 = vmatprep.subr.bf16.mxu1 %v1868_v61  ;;  %v1960_v61 = vpack.c.bf16 %v713_v54, %v709_v53  ;;  %v728_v24 = vld [vmem:[#allocation2 + $0x5b0] sm:$0xff]  ;;  %v735_v26 = vld [vmem:[#allocation2 + $0x5e8] sm:$0xff]  ;;  %v737_v28 = vld [vmem:[#allocation2 + $0x5f8] sm:$0xff] }
  0x92   : > { %v730_v32 = vld [vmem:[#allocation2 + $0x5c0] sm:$0xff]  ;;  %v732_v34 = vld [vmem:[#allocation2 + $0x5d0] sm:$0xff]  ;;  %v739_v38 = vld [vmem:[#allocation2 + $0x608] sm:$0xff] }
  0x93   : > { %1799 = vmatpush1.bf16.msra.mxu0 %v1798_v3  ;;  %v1890_v3 = vpack.c.bf16 %v710_v59, %v706_v58  ;;  %v734_v33 = vld [vmem:[#allocation2 + $0x5e0] sm:$0xff]  ;;  %v736_v37 = vld [vmem:[#allocation2 + $0x5f0] sm:$0xff]  ;;  %v743_v39 = vld [vmem:[#allocation2 + $0x628] sm:$0xff] }
  0x94   : > { %1871 = vmatpush1.bf16.msra.mxu1 %v1870_v4  ;;  %1801 = vmatprep.subr.bf16.mxu0 %v1800_v5  ;;  %v1962_v4 = vpack.c.bf16 %v712_v62, %v708_v60  ;;  %v1892_v5 = vpack.c.bf16 %v719_v0, %v715_v63  ;;  %v741_v41 = vld [vmem:[#allocation2 + $0x618] sm:$0xff]  ;;  %v1902_v46 = vpack.c.bf16 %v734_v33, %v730_v32  ;;  %v738_v47 = vld [vmem:[#allocation2 + $0x600] sm:$0xff]  ;;  %v740_v53 = vld [vmem:[#allocation2 + $0x610] sm:$0xff] }
  0x95   : > { %1873 = vmatprep.subr.bf16.mxu1 %v1872_v9  ;;  %v1964_v9 = vpack.c.bf16 %v721_v2, %v717_v1  ;;  %v1974_v50 = vpack.c.bf16 %v736_v37, %v732_v34  ;;  %v1904_v51 = vpack.c.bf16 %v743_v39, %v739_v38  ;;  %v742_v52 = vld [vmem:[#allocation2 + $0x620] sm:$0xff]  ;;  %v228_v54 = vld [vmem:[%s2631_s11 + $0x18] sm:$0x3]  ;;  %v751_v58 = vld [vmem:[#allocation2 + $0x668] sm:$0xff] }
  0x96   : > { %466 = vmatmul.mubr.f32.vlgmr.msra.gmra.mrb[0].mxu0 %v2639_v15  ;;  %v841_v60 = vrot.slane %v228_v54, 1  ;;  %v753_v62 = vld [vmem:[#allocation2 + $0x678] sm:$0xff]  ;;  %v1906_v63 = vpack.c.bf16 %v742_v52, %v738_v47  ;;  %v762_v37 = vld [vmem:[#allocation2 + $0x6c0] sm:$0xff]  ;;  %v764_v39 = vld [vmem:[#allocation2 + $0x6d0] sm:$0xff] }
  0x97   : > { %1803 = vmatpush1.bf16.msra.mxu0 %v1802_v17  ;;  %608 = vmatmul.mubr.f32.vlgmr.msra.gmra.mrb[0].mxu1 %v2639_v15  ;;  %v1894_v17 = vpack.c.bf16 %v718_v7, %v714_v6  ;;  %v846_v7 = vrot.slane %v2646_v42, 1  ;;  %v769_v32 = vld [vmem:[#allocation2 + $0x6f8] sm:$0xff]  ;;  %v766_v38 = vld [vmem:[#allocation2 + $0x6e0] sm:$0xff] }
  0x98   : > { %1875 = vmatpush1.bf16.msra.mxu1 %v1874_v18  ;;  %1805 = vmatprep.subr.bf16.mxu0 %v1804_v19  ;;  %v1966_v18 = vpack.c.bf16 %v720_v10, %v716_v8  ;;  %v1896_v19 = vpack.c.bf16 %v727_v12, %v723_v11  ;;  %v1293_v8 = vrot.slane %v2646_v42, 2  ;;  %v752_v10 = vld [vmem:[#allocation2 + $0x670] sm:$0xff]  ;;  %v755_v11 = vld [vmem:[#allocation2 + $0x688] sm:$0xff]  ;;  %v777_v47 = vld [vmem:[#allocation2 + $0x738] sm:$0xff] }
  0x99   : > { %1877 = vmatprep.subr.bf16.mxu1 %v1876_v23  ;;  %536 = vmatprep.mubr.f32.mxu0 %v2453_v35  ;;  %v1968_v23 = vpack.c.bf16 %v729_v14, %v725_v13  ;;  %v759_v12 = vld [vmem:[#allocation2 + $0x6a8] sm:$0xff]  ;;  %v757_v13 = vld [vmem:[#allocation2 + $0x698] sm:$0xff]  ;;  %v774_v52 = vld [vmem:[#allocation2 + $0x720] sm:$0xff] }
  0x9a   : > { %678 = vmatprep.mubr.f32.mxu1 %v2453_v35  ;;  %v761_v14 = vld [vmem:[#allocation2 + $0x6b8] sm:$0xff] }
  0x9b   : > { %1807 = vmatpush1.bf16.msra.mxu0 %v1806_v29  ;;  %v1898_v29 = vpack.c.bf16 %v726_v21, %v722_v20 }
  0x9c   : > { %1879 = vmatpush1.bf16.msra.mxu1 %v1878_v30  ;;  %1881 = vmatprep.subr.bf16.mxu0 %v1880_v31  ;;  %v1970_v30 = vpack.c.bf16 %v728_v24, %v724_v22  ;;  %v1900_v31 = vpack.c.bf16 %v735_v26, %v731_v25  ;;  %v1912_v22 = vpack.c.bf16 %v759_v12, %v755_v11  ;;  %v758_v24 = vld [vmem:[#allocation2 + $0x6a0] sm:$0xff]  ;;  %v756_v25 = vld [vmem:[#allocation2 + $0x690] sm:$0xff] }
  0x9d   : > { %1953 = vmatprep.subr.bf16.mxu1 %v1952_v36  ;;  %v1972_v36 = vpack.c.bf16 %v737_v28, %v733_v27  ;;  %v760_v26 = vld [vmem:[#allocation2 + $0x6b0] sm:$0xff]  ;;  %v763_v27 = vld [vmem:[#allocation2 + $0x6c8] sm:$0xff]  ;;  %v786_v12 = vld [vmem:[#allocation2 + $0x780] sm:$0xff] }
  0x9e   : > { %1724 = vmatmul.mubr.msk.f32.vlgmr.msra.gmra.mrb[0].mxu0 %vm397_vm0, %v2646_v42  ;;  %v767_v28 = vld [vmem:[#allocation2 + $0x6e8] sm:$0xff]  ;;  %v1986_v34 = vpack.c.bf16 %v760_v26, %v756_v25  ;;  %v798_v26 = vld [vmem:[#allocation2 + $0x7e0] sm:$0xff] }
  0x9f   : > { %1725 = vmatmul.mubr.msk.f32.vlgmr.msra.gmra.mrb[0].mxu1 %vm397_vm0, %v2646_v42  ;;  %1883 = vmatpush1.bf16.msra.mxu0 %v1882_v43  ;;  %v745_v43 = vld [vmem:[#allocation2 + $0x638] sm:$0xff]  ;;  %v1984_v42 = vpack.c.bf16 %v761_v14, %v757_v13  ;;  %v790_v13 = vld [vmem:[#allocation2 + $0x7a0] sm:$0xff]  ;;  %v788_v14 = vld [vmem:[#allocation2 + $0x790] sm:$0xff] }
  0xa0   : > { %1955 = vmatpush1.bf16.msra.mxu1 %v1954_v44  ;;  %1885 = vmatprep.subr.bf16.mxu0 %v1884_v45  ;;  %v2654_v44 = vld [vmem:[%s2631_s11 + $0x20] sm:$0x3]  ;;  %v840_v45 = vrot.slane %v2639_v15, 1 }
  0xa1   : > { %1957 = vmatprep.subr.bf16.mxu1 %v1956_v49  ;;  %v844_v48 = vrot.slane %v2654_v44, 1  ;;  %v1287_v49 = vrot.slane %v2639_v15, 2  ;;  %v1288_v15 = vrot.slane %v228_v54, 2 }
  0xa2   : > { %v2662_v0 = vsel %vm839_vm1, %v840_v45, %v841_v60  ;;  %v775_v45 = vld [vmem:[#allocation2 + $0x728] sm:$0xff] }
  0xa3   : > { %1887 = vmatpush1.bf16.msra.mxu0 %v1886_v55  ;;  %v1976_v55 = vpack.c.bf16 %v745_v43, %v741_v41  ;;  %v845_v59 = vsel %vm839_vm1, %v843_v40, %v844_v48  ;;  %v2665_v6 = vsel %vm1286_vm2, %v1287_v49, %v1288_v15  ;;  %v768_v41 = vld [vmem:[#allocation2 + $0x6f0] sm:$0xff]  ;;  %v771_v43 = vld [vmem:[#allocation2 + $0x708] sm:$0xff]  ;;  %v1918_v48 = vpack.c.bf16 %v766_v38, %v762_v37  ;;  %v778_v15 = vld [vmem:[#allocation2 + $0x740] sm:$0xff] }
  0xa4   : > { %1959 = vmatpush1.bf16.msra.mxu1 %v1958_v56  ;;  %1889 = vmatprep.subr.bf16.mxu0 %v1888_v57  ;;  %v744_v56 = vld [vmem:[#allocation2 + $0x630] sm:$0xff]  ;;  %v747_v57 = vld [vmem:[#allocation2 + $0x648] sm:$0xff]  ;;  %v1990_v49 = vpack.c.bf16 %v768_v41, %v764_v39  ;;  %v806_v41 = vld [vmem:[#allocation2 + $0x820] sm:$0xff] }
  0xa5   : > { %1961 = vmatprep.subr.bf16.mxu1 %v1960_v61  ;;  %v749_v61 = vld [vmem:[#allocation2 + $0x658] sm:$0xff]  ;;  %917 = vmatprep.mubr.f32.mxu0 %v845_v59  ;;  %v1978_v1 = vpack.c.bf16 %v744_v56, %v740_v53  ;;  %v1908_v2 = vpack.c.bf16 %v751_v58, %v747_v57  ;;  %v772_v53 = vld [vmem:[#allocation2 + $0x710] sm:$0xff]  ;;  %v779_v56 = vld [vmem:[#allocation2 + $0x748] sm:$0xff] }
  0xa6   : > { %1059 = vmatprep.mubr.f32.mxu1 %v845_v59  ;;  %v783_v57 = vld [vmem:[#allocation2 + $0x768] sm:$0xff]  ;;  %v781_v58 = vld [vmem:[#allocation2 + $0x758] sm:$0xff] }
  0xa7   : > { %1891 = vmatpush1.bf16.msra.mxu0 %v1890_v3  ;;  %v746_v3 = vld [vmem:[#allocation2 + $0x640] sm:$0xff]  ;;  %v785_v59 = vld [vmem:[#allocation2 + $0x778] sm:$0xff] }
  0xa8   : > { %1963 = vmatpush1.bf16.msra.mxu1 %v1962_v4  ;;  %1893 = vmatprep.subr.bf16.mxu0 %v1892_v5  ;;  %v750_v4 = vld [vmem:[#allocation2 + $0x660] sm:$0xff]  ;;  %v748_v5 = vld [vmem:[#allocation2 + $0x650] sm:$0xff] }
  0xa9   : > { %1965 = vmatprep.subr.bf16.mxu1 %v1964_v9  ;;  %v1980_v9 = vpack.c.bf16 %v753_v62, %v749_v61  ;;  %v1982_v21 = vpack.c.bf16 %v752_v10, %v748_v5  ;;  %v1924_v62 = vpack.c.bf16 %v783_v57, %v779_v56  ;;  %v791_v5 = vld [vmem:[#allocation2 + $0x7a8] sm:$0xff]  ;;  %v812_v56 = vld [vmem:[#allocation2 + $0x850] sm:$0xff] }
  0xab   : > { %1895 = vmatpush1.bf16.msra.mxu0 %v1894_v17  ;;  %v230_v17 = vld [vmem:[%s2631_s11 + $0x28] sm:$0x3] }
  0xac   : > { %1967 = vmatpush1.bf16.msra.mxu1 %v1966_v18  ;;  %1897 = vmatprep.subr.bf16.mxu0 %v1896_v19  ;;  %v1910_v18 = vpack.c.bf16 %v750_v4, %v746_v3  ;;  %v847_v19 = vrot.slane %v230_v17, 1  ;;  %v1294_v20 = vrot.slane %v230_v17, 2  ;;  %v784_v3 = vld [vmem:[#allocation2 + $0x770] sm:$0xff]  ;;  %v787_v4 = vld [vmem:[#allocation2 + $0x788] sm:$0xff] }
  0xad   : > { %1969 = vmatprep.subr.bf16.mxu1 %v1968_v23  ;;  %v754_v23 = vld [vmem:[#allocation2 + $0x680] sm:$0xff]  ;;  %v1928_v11 = vpack.c.bf16 %v791_v5, %v787_v4  ;;  %v820_v4 = vld [vmem:[#allocation2 + $0x890] sm:$0xff] }
  0xae   : > { %v1914_v33 = vpack.c.bf16 %v758_v24, %v754_v23  ;;  %v1930_v23 = vpack.c.bf16 %v790_v13, %v786_v12 }
  0xaf   : > { %1899 = vmatpush1.bf16.msra.mxu0 %v1898_v29  ;;  %v2671_v29 = vsel %vm839_vm1, %v846_v7, %v847_v19  ;;  %v789_v7 = vld [vmem:[#allocation2 + $0x798] sm:$0xff]  ;;  %v795_v19 = vld [vmem:[#allocation2 + $0x7c8] sm:$0xff] }
  0xb0   : > { %1971 = vmatpush1.bf16.msra.mxu1 %v1970_v30  ;;  %1901 = vmatprep.subr.bf16.mxu0 %v1900_v31  ;;  %v2674_v30 = vsel %vm1286_vm2, %v1293_v8, %v1294_v20  ;;  %v765_v31 = vld [vmem:[#allocation2 + $0x6d8] sm:$0xff]  ;;  %v799_v20 = vld [vmem:[#allocation2 + $0x7e8] sm:$0xff] }
  0xb1   : > { %1973 = vmatprep.subr.bf16.mxu1 %v1972_v36  ;;  %v1916_v36 = vpack.c.bf16 %v767_v28, %v763_v27  ;;  %v1988_v40 = vpack.c.bf16 %v769_v32, %v765_v31  ;;  %v793_v8 = vld [vmem:[#allocation2 + $0x7b8] sm:$0xff]  ;;  %v1932_v25 = vpack.c.bf16 %v799_v20, %v795_v19  ;;  %v796_v27 = vld [vmem:[#allocation2 + $0x7d0] sm:$0xff]  ;;  %v803_v32 = vld [vmem:[#allocation2 + $0x808] sm:$0xff] }
  0xb2   : > { %v2000_v17 = vpack.c.bf16 %v793_v8, %v789_v7  ;;  %v800_v31 = vld [vmem:[#allocation2 + $0x7f0] sm:$0xff]  ;;  %v827_v8 = vld [vmem:[#allocation2 + $0x8c8] sm:$0xff] }
  0xb3   : > { %1903 = vmatpush1.bf16.msra.mxu0 %v1902_v46  ;;  %v773_v46 = vld [vmem:[#allocation2 + $0x718] sm:$0xff]  ;;  %v2006_v38 = vpack.c.bf16 %v800_v31, %v796_v27  ;;  %v824_v7 = vld [vmem:[#allocation2 + $0x8b0] sm:$0xff]  ;;  %v1146_v31 = vld [vmem:[#allocation2 + $0x920] sm:$0xff] }
  0xb4   : > { %1975 = vmatpush1.bf16.msra.mxu1 %v1974_v50  ;;  %1905 = vmatprep.subr.bf16.mxu0 %v1904_v51  ;;  %v1920_v50 = vpack.c.bf16 %v775_v45, %v771_v43  ;;  %v770_v51 = vld [vmem:[#allocation2 + $0x700] sm:$0xff]  ;;  %v1992_v54 = vpack.c.bf16 %v777_v47, %v773_v46  ;;  %v804_v43 = vld [vmem:[#allocation2 + $0x810] sm:$0xff]  ;;  %v811_v47 = vld [vmem:[#allocation2 + $0x848] sm:$0xff]  ;;  %v2018_v13 = vpack.c.bf16 %v824_v7, %v820_v4 }
  0xb5   : > { %1977 = vmatprep.subr.bf16.mxu1 %v1976_v55  ;;  %v776_v55 = vld [vmem:[#allocation2 + $0x730] sm:$0xff]  ;;  %v1922_v60 = vpack.c.bf16 %v774_v52, %v770_v51  ;;  %v1166_v4 = vld [vmem:[#allocation2 + $0x9c0] sm:$0xff] }
  0xb6   : > { %v1994_v61 = vpack.c.bf16 %v776_v55, %v772_v53  ;;  %v808_v46 = vld [vmem:[#allocation2 + $0x830] sm:$0xff]  ;;  %v814_v55 = vld [vmem:[#allocation2 + $0x860] sm:$0xff] }
  0xb7   : > { %1907 = vmatpush1.bf16.msra.mxu0 %v1906_v63  ;;  %v782_v63 = vld [vmem:[#allocation2 + $0x760] sm:$0xff]  ;;  %v2010_v52 = vpack.c.bf16 %v808_v46, %v804_v43  ;;  %v828_v19 = vld [vmem:[#allocation2 + $0x8d0] sm:$0xff] }
  0xb8   : > { %1979 = vmatpush1.bf16.msra.mxu1 %v1978_v1  ;;  %1909 = vmatprep.subr.bf16.mxu0 %v1908_v2  ;;  %v780_v1 = vld [vmem:[#allocation2 + $0x750] sm:$0xff]  ;;  %v1996_v2 = vpack.c.bf16 %v785_v59, %v781_v58  ;;  %v819_v59 = vld [vmem:[#allocation2 + $0x888] sm:$0xff]  ;;  %v1150_v46 = vld [vmem:[#allocation2 + $0x940] sm:$0xff] }
  0xb9   : > { %1981 = vmatprep.subr.bf16.mxu1 %v1980_v9  ;;  %v1926_v9 = vpack.c.bf16 %v782_v63, %v778_v15  ;;  %v1998_v10 = vpack.c.bf16 %v784_v3, %v780_v1  ;;  %v816_v58 = vld [vmem:[#allocation2 + $0x870] sm:$0xff]  ;;  %v822_v3 = vld [vmem:[#allocation2 + $0x8a0] sm:$0xff] }
  0xba   : > { %v2014_v63 = vpack.c.bf16 %v816_v58, %v812_v56  ;;  %v1162_v58 = vld [vmem:[#allocation2 + $0x9a0] sm:$0xff]  ;;  %v1168_v7 = vld [vmem:[#allocation2 + $0x9d0] sm:$0xff] }
  0xbb   : > { %1911 = vmatpush1.bf16.msra.mxu0 %v1910_v18  ;;  %v792_v18 = vld [vmem:[#allocation2 + $0x7b0] sm:$0xff] }
  0xbc   : > { %1983 = vmatpush1.bf16.msra.mxu1 %v1982_v21  ;;  %1913 = vmatprep.subr.bf16.mxu0 %v1912_v22  ;;  %v797_v21 = vld [vmem:[#allocation2 + $0x7d8] sm:$0xff]  ;;  %v2002_v24 = vpack.c.bf16 %v792_v18, %v788_v14  ;;  %v830_v18 = vld [vmem:[#allocation2 + $0x8e0] sm:$0xff] }
  0xbd   : > { %1985 = vmatprep.subr.bf16.mxu1 %v1984_v42  ;;  %v801_v22 = vld [vmem:[#allocation2 + $0x7f8] sm:$0xff]  ;;  %v794_v42 = vld [vmem:[#allocation2 + $0x7c0] sm:$0xff] }
  0xbe   : > { %v2004_v28 = vpack.c.bf16 %v801_v22, %v797_v21  ;;  %v1934_v37 = vpack.c.bf16 %v798_v26, %v794_v42  ;;  %v832_v21 = vld [vmem:[#allocation2 + $0x8f0] sm:$0xff]  ;;  %v1143_v22 = vld [vmem:[#allocation2 + $0x908] sm:$0xff] }
  0xbf   : > { %1915 = vmatpush1.bf16.msra.mxu0 %v1914_v33  ;;  %v807_v33 = vld [vmem:[#allocation2 + $0x828] sm:$0xff]  ;;  %v2022_v26 = vpack.c.bf16 %v832_v21, %v828_v19  ;;  %v1174_v19 = vld [vmem:[#allocation2 + $0xa00] sm:$0xff]  ;;  %v1176_v21 = vld [vmem:[#allocation2 + $0xa10] sm:$0xff] }
  0xc0   : > { %1987 = vmatpush1.bf16.msra.mxu1 %v1986_v34  ;;  %1917 = vmatprep.subr.bf16.mxu0 %v1916_v36  ;;  %v805_v34 = vld [vmem:[#allocation2 + $0x818] sm:$0xff]  ;;  %v1936_v39 = vpack.c.bf16 %v807_v33, %v803_v32  ;;  %v1144_v32 = vld [vmem:[#allocation2 + $0x910] sm:$0xff] }
  0xc1   : > { %1989 = vmatprep.subr.bf16.mxu1 %v1988_v40  ;;  %v809_v36 = vld [vmem:[#allocation2 + $0x838] sm:$0xff]  ;;  %v802_v40 = vld [vmem:[#allocation2 + $0x800] sm:$0xff] }
  0xc2   : > { %v2008_v45 = vpack.c.bf16 %v809_v36, %v805_v34  ;;  %v1938_v51 = vpack.c.bf16 %v806_v41, %v802_v40  ;;  %v1148_v34 = vld [vmem:[#allocation2 + $0x930] sm:$0xff]  ;;  %v1151_v36 = vld [vmem:[#allocation2 + $0x948] sm:$0xff]  ;;  %v1291_v40 = vrot.slane %v2654_v44, 2 }
  0xc3   : > { %1919 = vmatpush1.bf16.msra.mxu0 %v1918_v48  ;;  %v815_v48 = vld [vmem:[#allocation2 + $0x868] sm:$0xff]  ;;  %v2098_v43 = vpack.c.bf16 %v1148_v34, %v1144_v32  ;;  %v1182_v32 = vld [vmem:[#allocation2 + $0xa40] sm:$0xff]  ;;  %v1184_v34 = vld [vmem:[#allocation2 + $0xa50] sm:$0xff] }
  0xc4   : > { %1991 = vmatpush1.bf16.msra.mxu1 %v1990_v49  ;;  %1921 = vmatprep.subr.bf16.mxu0 %v1920_v50  ;;  %v813_v49 = vld [vmem:[#allocation2 + $0x858] sm:$0xff]  ;;  %v1940_v53 = vpack.c.bf16 %v815_v48, %v811_v47  ;;  %v1154_v47 = vld [vmem:[#allocation2 + $0x960] sm:$0xff]  ;;  %v1152_v48 = vld [vmem:[#allocation2 + $0x950] sm:$0xff] }
  0xc5   : > { %1993 = vmatprep.subr.bf16.mxu1 %v1992_v54  ;;  %v817_v50 = vld [vmem:[#allocation2 + $0x878] sm:$0xff]  ;;  %v810_v54 = vld [vmem:[#allocation2 + $0x840] sm:$0xff] }
  0xc6   : > { %v2012_v57 = vpack.c.bf16 %v817_v50, %v813_v49  ;;  %v1942_v15 = vpack.c.bf16 %v814_v55, %v810_v54  ;;  %v1156_v50 = vld [vmem:[#allocation2 + $0x970] sm:$0xff]  ;;  %v2030_v54 = vpack.c.bf16 %v1154_v47, %v1150_v46  ;;  %v1190_v46 = vld [vmem:[#allocation2 + $0xa80] sm:$0xff] }
  0xc7   : > { %1923 = vmatpush1.bf16.msra.mxu0 %v1922_v60  ;;  %v823_v60 = vld [vmem:[#allocation2 + $0x8a8] sm:$0xff]  ;;  %v2102_v55 = vpack.c.bf16 %v1156_v50, %v1152_v48  ;;  %v1194_v47 = vld [vmem:[#allocation2 + $0xaa0] sm:$0xff]  ;;  %v1192_v48 = vld [vmem:[#allocation2 + $0xa90] sm:$0xff] }
  0xc8   : > { %1995 = vmatpush1.bf16.msra.mxu1 %v1994_v61  ;;  %1925 = vmatprep.subr.bf16.mxu0 %v1924_v62  ;;  %v821_v61 = vld [vmem:[#allocation2 + $0x898] sm:$0xff]  ;;  %v1944_v1 = vpack.c.bf16 %v823_v60, %v819_v59  ;;  %v1160_v59 = vld [vmem:[#allocation2 + $0x990] sm:$0xff] }
  0xc9   : > { %1997 = vmatprep.subr.bf16.mxu1 %v1996_v2  ;;  %v825_v62 = vld [vmem:[#allocation2 + $0x8b8] sm:$0xff]  ;;  %v818_v2 = vld [vmem:[#allocation2 + $0x880] sm:$0xff]  ;;  %v1196_v50 = vld [vmem:[#allocation2 + $0xab0] sm:$0xff] }
  0xca   : > { %v2016_v5 = vpack.c.bf16 %v825_v62, %v821_v61  ;;  %v1946_v12 = vpack.c.bf16 %v822_v3, %v818_v2  ;;  %v1164_v61 = vld [vmem:[#allocation2 + $0x9b0] sm:$0xff]  ;;  %v1167_v62 = vld [vmem:[#allocation2 + $0x9c8] sm:$0xff] }
  0xcb   : > { %1927 = vmatpush1.bf16.msra.mxu0 %v1926_v9  ;;  %v831_v9 = vld [vmem:[#allocation2 + $0x8e8] sm:$0xff]  ;;  %v2106_v2 = vpack.c.bf16 %v1164_v61, %v1160_v59 }
  0xcc   : > { %1999 = vmatpush1.bf16.msra.mxu1 %v1998_v10  ;;  %1929 = vmatprep.subr.bf16.mxu0 %v1928_v11  ;;  %v829_v10 = vld [vmem:[#allocation2 + $0x8d8] sm:$0xff]  ;;  %v1948_v14 = vpack.c.bf16 %v831_v9, %v827_v8  ;;  %v1172_v9 = vld [vmem:[#allocation2 + $0x9f0] sm:$0xff]  ;;  %v1207_v61 = vld [vmem:[#allocation2 + $0xb08] sm:$0xff] }
  0xcd   : > { %2001 = vmatprep.subr.bf16.mxu1 %v2000_v17  ;;  %v833_v11 = vld [vmem:[#allocation2 + $0x8f8] sm:$0xff]  ;;  %v826_v17 = vld [vmem:[#allocation2 + $0x8c0] sm:$0xff] }
  0xce   : > { %v2020_v20 = vpack.c.bf16 %v833_v11, %v829_v10  ;;  %v1950_v42 = vpack.c.bf16 %v830_v18, %v826_v17  ;;  %v1175_v10 = vld [vmem:[#allocation2 + $0xa08] sm:$0xff]  ;;  %v2110_v17 = vpack.c.bf16 %v1172_v9, %v1168_v7 }
  0xcf   : > { %1931 = vmatpush1.bf16.msra.mxu0 %v1930_v23  ;;  %v1147_v23 = vld [vmem:[#allocation2 + $0x928] sm:$0xff] }
  0xd0   : > { %2003 = vmatpush1.bf16.msra.mxu1 %v2002_v24  ;;  %1933 = vmatprep.subr.bf16.mxu0 %v1932_v25  ;;  %v1145_v24 = vld [vmem:[#allocation2 + $0x918] sm:$0xff]  ;;  %v2024_v27 = vpack.c.bf16 %v1147_v23, %v1143_v22  ;;  %v1179_v11 = vld [vmem:[#allocation2 + $0xa28] sm:$0xff]  ;;  %v1180_v23 = vld [vmem:[#allocation2 + $0xa30] sm:$0xff] }
  0xd1   : > { %2005 = vmatprep.subr.bf16.mxu1 %v2004_v28  ;;  %v1149_v25 = vld [vmem:[#allocation2 + $0x938] sm:$0xff]  ;;  %v1142_v28 = vld [vmem:[#allocation2 + $0x900] sm:$0xff]  ;;  %v2040_v18 = vpack.c.bf16 %v1179_v11, %v1175_v10  ;;  %v1215_v9 = vld [vmem:[#allocation2 + $0xb48] sm:$0xff] }
  0xd2   : > { %v2096_v33 = vpack.c.bf16 %v1149_v25, %v1145_v24  ;;  %v2026_v41 = vpack.c.bf16 %v1146_v31, %v1142_v28  ;;  %v1183_v24 = vld [vmem:[#allocation2 + $0xa48] sm:$0xff]  ;;  %v2114_v28 = vpack.c.bf16 %v1180_v23, %v1176_v21  ;;  %v1217_v11 = vld [vmem:[#allocation2 + $0xb58] sm:$0xff] }
  0xd3   : > { %1935 = vmatpush1.bf16.msra.mxu0 %v1934_v37  ;;  %v1155_v37 = vld [vmem:[#allocation2 + $0x968] sm:$0xff] }
  0xd4   : > { %2007 = vmatpush1.bf16.msra.mxu1 %v2006_v38  ;;  %1937 = vmatprep.subr.bf16.mxu0 %v1936_v39  ;;  %v1153_v38 = vld [vmem:[#allocation2 + $0x958] sm:$0xff]  ;;  %v1187_v25 = vld [vmem:[#allocation2 + $0xa68] sm:$0xff] }
  0xd5   : > { %2009 = vmatprep.subr.bf16.mxu1 %v2008_v45  ;;  %v1157_v39 = vld [vmem:[#allocation2 + $0x978] sm:$0xff]  ;;  %v2028_v45 = vpack.c.bf16 %v1155_v37, %v1151_v36  ;;  %v2044_v31 = vpack.c.bf16 %v1187_v25, %v1183_v24  ;;  %v1188_v37 = vld [vmem:[#allocation2 + $0xa70] sm:$0xff]  ;;  %v1219_v10 = vld [vmem:[#allocation2 + $0xb68] sm:$0xff] }
  0xd6   : > { %v2100_v49 = vpack.c.bf16 %v1157_v39, %v1153_v38  ;;  %v1191_v38 = vld [vmem:[#allocation2 + $0xa88] sm:$0xff]  ;;  %v1225_v25 = vld [vmem:[#allocation2 + $0xb98] sm:$0xff] }
  0xd7   : > { %1939 = vmatpush1.bf16.msra.mxu0 %v1938_v51  ;;  %v1159_v51 = vld [vmem:[#allocation2 + $0x988] sm:$0xff] }
  0xd8   : > { %2011 = vmatpush1.bf16.msra.mxu1 %v2010_v52  ;;  %1941 = vmatprep.subr.bf16.mxu0 %v1940_v53  ;;  %v1163_v52 = vld [vmem:[#allocation2 + $0x9a8] sm:$0xff]  ;;  %v1165_v53 = vld [vmem:[#allocation2 + $0x9b8] sm:$0xff] }
  0xd9   : > { %2013 = vmatprep.subr.bf16.mxu1 %v2012_v57  ;;  %v2032_v56 = vpack.c.bf16 %v1163_v52, %v1159_v51  ;;  %v1158_v57 = vld [vmem:[#allocation2 + $0x980] sm:$0xff]  ;;  %v1195_v39 = vld [vmem:[#allocation2 + $0xaa8] sm:$0xff] }
  0xda   : > { %v1199_v51 = vld [vmem:[#allocation2 + $0xac8] sm:$0xff] }
  0xdb   : > { %1943 = vmatpush1.bf16.msra.mxu0 %v1942_v15  ;;  %v1171_v15 = vld [vmem:[#allocation2 + $0x9e8] sm:$0xff] }
  0xdc   : > { %2015 = vmatpush1.bf16.msra.mxu1 %v2014_v63  ;;  %1945 = vmatprep.subr.bf16.mxu0 %v1944_v1  ;;  %v1169_v63 = vld [vmem:[#allocation2 + $0x9d8] sm:$0xff]  ;;  %v2036_v3 = vpack.c.bf16 %v1171_v15, %v1167_v62  ;;  %v1203_v52 = vld [vmem:[#allocation2 + $0xae8] sm:$0xff] }
  0xdd   : > { %2017 = vmatprep.subr.bf16.mxu1 %v2016_v5  ;;  %v1173_v1 = vld [vmem:[#allocation2 + $0x9f8] sm:$0xff]  ;;  %v1170_v5 = vld [vmem:[#allocation2 + $0x9e0] sm:$0xff]  ;;  %v1211_v62 = vld [vmem:[#allocation2 + $0xb28] sm:$0xff] }
  0xde   : > { %918 = vmatmul.mubr.f32.vlgmr.msra.gmra.mrb[0].mxu0 %v2662_v0  ;;  %v2108_v8 = vpack.c.bf16 %v1173_v1, %v1169_v63  ;;  %v1209_v15 = vld [vmem:[#allocation2 + $0xb18] sm:$0xff]  ;;  %v1223_v23 = vld [vmem:[#allocation2 + $0xb88] sm:$0xff] }
  0xdf   : > { %1947 = vmatpush1.bf16.msra.mxu0 %v1946_v12  ;;  %1060 = vmatmul.mubr.f32.vlgmr.msra.gmra.mrb[0].mxu1 %v2662_v0  ;;  %v1290_v0 = vrot.slane %v2634_v16, 2  ;;  %v1161_v16 = vld [vmem:[#allocation2 + $0x998] sm:$0xff]  ;;  %v1227_v24 = vld [vmem:[#allocation2 + $0xba8] sm:$0xff] }
  0xe0   : > { %2019 = vmatpush1.bf16.msra.mxu1 %v2018_v13  ;;  %1949 = vmatprep.subr.bf16.mxu0 %v1948_v14  ;;  %v2104_v60 = vpack.c.bf16 %v1165_v53, %v1161_v16  ;;  %v1177_v12 = vld [vmem:[#allocation2 + $0xa18] sm:$0xff]  ;;  %v2038_v14 = vpack.c.bf16 %v1170_v5, %v1166_v4  ;;  %v1210_v4 = vld [vmem:[#allocation2 + $0xb20] sm:$0xff]  ;;  %v1208_v5 = vld [vmem:[#allocation2 + $0xb10] sm:$0xff] }
  0xe1   : > { %2021 = vmatprep.subr.bf16.mxu1 %v2020_v20  ;;  %988 = vmatprep.mubr.f32.mxu0 %v2453_v35  ;;  %v1292_v44 = vsel %vm1286_vm2, %v1290_v0, %v1291_v40  ;;  %v1181_v13 = vld [vmem:[#allocation2 + $0xa38] sm:$0xff]  ;;  %v1178_v20 = vld [vmem:[#allocation2 + $0xa20] sm:$0xff] }
  0xe2   : > { %1130 = vmatprep.mubr.f32.mxu1 %v2453_v35  ;;  %v2112_v22 = vpack.c.bf16 %v1181_v13, %v1177_v12  ;;  %v1193_v0 = vld [vmem:[#allocation2 + $0xa98] sm:$0xff] }
  0xe3   : > { %1951 = vmatpush1.bf16.msra.mxu0 %v1950_v42  ;;  %v1185_v42 = vld [vmem:[#allocation2 + $0xa58] sm:$0xff] }
  0xe4   : > { %2023 = vmatpush1.bf16.msra.mxu1 %v2022_v26  ;;  %2025 = vmatprep.subr.bf16.mxu0 %v2024_v27  ;;  %v1189_v26 = vld [vmem:[#allocation2 + $0xa78] sm:$0xff]  ;;  %v2042_v27 = vpack.c.bf16 %v1178_v20, %v1174_v19  ;;  %v1218_v19 = vld [vmem:[#allocation2 + $0xb60] sm:$0xff]  ;;  %v1216_v20 = vld [vmem:[#allocation2 + $0xb50] sm:$0xff] }
  0xe5   : > { %2097 = vmatprep.subr.bf16.mxu1 %v2096_v33  ;;  %v1186_v33 = vld [vmem:[#allocation2 + $0xa60] sm:$0xff]  ;;  %v2116_v36 = vpack.c.bf16 %v1189_v26, %v1185_v42  ;;  %v1197_v40 = vld [vmem:[#allocation2 + $0xab8] sm:$0xff] }
  0xe6   : > { %1726 = vmatmul.mubr.msk.f32.vlgmr.msra.gmra.mrb[0].mxu0 %vm397_vm0, %v2671_v29  ;;  %v1201_v16 = vld [vmem:[#allocation2 + $0xad8] sm:$0xff] }
  0xe7   : > { %1727 = vmatmul.mubr.msk.f32.vlgmr.msra.gmra.mrb[0].mxu1 %vm397_vm0, %v2671_v29  ;;  %2027 = vmatpush1.bf16.msra.mxu0 %v2026_v41  ;;  %v2034_v29 = vpack.c.bf16 %v1162_v58, %v1158_v57  ;;  %v2046_v41 = vpack.c.bf16 %v1186_v33, %v1182_v32  ;;  %v1205_v53 = vld [vmem:[#allocation2 + $0xaf8] sm:$0xff]  ;;  %v1202_v57 = vld [vmem:[#allocation2 + $0xae0] sm:$0xff]  ;;  %v1200_v58 = vld [vmem:[#allocation2 + $0xad0] sm:$0xff] }
  0xe8   : > { %2099 = vmatpush1.bf16.msra.mxu1 %v2098_v43  ;;  %2029 = vmatprep.subr.bf16.mxu0 %v2028_v45  ;;  %v2118_v43 = vpack.c.bf16 %v1188_v37, %v1184_v34  ;;  %v2048_v45 = vpack.c.bf16 %v1195_v39, %v1191_v38  ;;  %v2124_v59 = vpack.c.bf16 %v1205_v53, %v1201_v16  ;;  %v1213_v63 = vld [vmem:[#allocation2 + $0xb38] sm:$0xff]  ;;  %v1226_v32 = vld [vmem:[#allocation2 + $0xba0] sm:$0xff]  ;;  %v1224_v33 = vld [vmem:[#allocation2 + $0xb90] sm:$0xff] }
  0xe9   : > { %2101 = vmatprep.subr.bf16.mxu1 %v2100_v49  ;;  %1364 = vmatprep.mubr.f32.mxu0 %v1292_v44  ;;  %v2120_v49 = vpack.c.bf16 %v1197_v40, %v1193_v0  ;;  %v2128_v7 = vpack.c.bf16 %v1213_v63, %v1209_v15  ;;  %v1221_v12 = vld [vmem:[#allocation2 + $0xb78] sm:$0xff]  ;;  %v1231_v37 = vld [vmem:[#allocation2 + $0xbc8] sm:$0xff] }
  0xea   : > { %1506 = vmatprep.mubr.f32.mxu1 %v1292_v44  ;;  %v2050_v44 = vpack.c.bf16 %v1194_v47, %v1190_v46  ;;  %v2132_v21 = vpack.c.bf16 %v1221_v12, %v1217_v11  ;;  %v1229_v42 = vld [vmem:[#allocation2 + $0xbb8] sm:$0xff]  ;;  %v1235_v38 = vld [vmem:[#allocation2 + $0xbe8] sm:$0xff]  ;;  %v1234_v46 = vld [vmem:[#allocation2 + $0xbe0] sm:$0xff] }
  0xeb   : > { %2031 = vmatpush1.bf16.msra.mxu0 %v2030_v54  ;;  %v2122_v54 = vpack.c.bf16 %v1196_v50, %v1192_v48  ;;  %v2136_v34 = vpack.c.bf16 %v1229_v42, %v1225_v25  ;;  %v1233_v39 = vld [vmem:[#allocation2 + $0xbd8] sm:$0xff]  ;;  %v1232_v47 = vld [vmem:[#allocation2 + $0xbd0] sm:$0xff]  ;;  %v1239_v50 = vld [vmem:[#allocation2 + $0xc08] sm:$0xff] }
  0xec   : > { %2103 = vmatpush1.bf16.msra.mxu1 %v2102_v55  ;;  %2033 = vmatprep.subr.bf16.mxu0 %v2032_v56  ;;  %v2052_v55 = vpack.c.bf16 %v1203_v52, %v1199_v51  ;;  %v1198_v56 = vld [vmem:[#allocation2 + $0xac0] sm:$0xff]  ;;  %v1237_v0 = vld [vmem:[#allocation2 + $0xbf8] sm:$0xff]  ;;  %v1243_v51 = vld [vmem:[#allocation2 + $0xc28] sm:$0xff] }
  0xed   : > { %2105 = vmatprep.subr.bf16.mxu1 %v2104_v60  ;;  %v1204_v60 = vld [vmem:[#allocation2 + $0xaf0] sm:$0xff]  ;;  %v2054_v1 = vpack.c.bf16 %v1202_v57, %v1198_v56  ;;  %v2140_v48 = vpack.c.bf16 %v1237_v0, %v1233_v39  ;;  %v1241_v52 = vld [vmem:[#allocation2 + $0xc18] sm:$0xff]  ;;  %v1242_v56 = vld [vmem:[#allocation2 + $0xc20] sm:$0xff] }
  0xee   : > { %v1245_v16 = vld [vmem:[#allocation2 + $0xc38] sm:$0xff]  ;;  %v1240_v57 = vld [vmem:[#allocation2 + $0xc10] sm:$0xff] }
  0xef   : > { %2035 = vmatpush1.bf16.msra.mxu0 %v2034_v29  ;;  %v2126_v29 = vpack.c.bf16 %v1204_v60, %v1200_v58  ;;  %v2144_v58 = vpack.c.bf16 %v1245_v16, %v1241_v52  ;;  %v1247_v60 = vld [vmem:[#allocation2 + $0xc48] sm:$0xff]  ;;  %v1253_v15 = vld [vmem:[#allocation2 + $0xc78] sm:$0xff] }
  0xf0   : > { %2107 = vmatpush1.bf16.msra.mxu1 %v2106_v2  ;;  %2037 = vmatprep.subr.bf16.mxu0 %v2036_v3  ;;  %v2056_v2 = vpack.c.bf16 %v1211_v62, %v1207_v61  ;;  %v1206_v3 = vld [vmem:[#allocation2 + $0xb00] sm:$0xff]  ;;  %v1251_v61 = vld [vmem:[#allocation2 + $0xc68] sm:$0xff]  ;;  %v1249_v62 = vld [vmem:[#allocation2 + $0xc58] sm:$0xff] }
  0xf1   : > { %2109 = vmatprep.subr.bf16.mxu1 %v2108_v8  ;;  %v1212_v8 = vld [vmem:[#allocation2 + $0xb30] sm:$0xff]  ;;  %v2058_v13 = vpack.c.bf16 %v1210_v4, %v1206_v3  ;;  %v1250_v3 = vld [vmem:[#allocation2 + $0xc60] sm:$0xff]  ;;  %v1261_v11 = vld [vmem:[#allocation2 + $0xcb8] sm:$0xff] }
  0xf2   : > { %v1248_v4 = vld [vmem:[#allocation2 + $0xc50] sm:$0xff]  ;;  %v1269_v25 = vld [vmem:[#allocation2 + $0xcf8] sm:$0xff] }
  0xf3   : > { %2039 = vmatpush1.bf16.msra.mxu0 %v2038_v14  ;;  %v2130_v14 = vpack.c.bf16 %v1212_v8, %v1208_v5  ;;  %v2148_v5 = vpack.c.bf16 %v1253_v15, %v1249_v62  ;;  %v1255_v8 = vld [vmem:[#allocation2 + $0xc88] sm:$0xff]  ;;  %v1277_v39 = vld [vmem:[#allocation2 + $0xd38] sm:$0xff]  ;;  %v231_v15 = vld [vmem:[#allocation5] sm:$0xf] }
  0xf4   : > { %2111 = vmatpush1.bf16.msra.mxu1 %v2110_v17  ;;  %2041 = vmatprep.subr.bf16.mxu0 %v2040_v18  ;;  %v2060_v17 = vpack.c.bf16 %v1219_v10, %v1215_v9  ;;  %v1214_v18 = vld [vmem:[#allocation2 + $0xb40] sm:$0xff]  ;;  %v1259_v9 = vld [vmem:[#allocation2 + $0xca8] sm:$0xff]  ;;  %v1257_v10 = vld [vmem:[#allocation2 + $0xc98] sm:$0xff] }
  0xf5   : > { %2113 = vmatprep.subr.bf16.mxu1 %v2112_v22  ;;  %v1220_v22 = vld [vmem:[#allocation2 + $0xb70] sm:$0xff]  ;;  %v2062_v26 = vpack.c.bf16 %v1218_v19, %v1214_v18  ;;  %v1258_v18 = vld [vmem:[#allocation2 + $0xca0] sm:$0xff]  ;;  %v1285_v52 = vld [vmem:[#allocation2 + $0xd78] sm:$0xff] }
  0xf6   : > { %v1256_v19 = vld [vmem:[#allocation2 + $0xc90] sm:$0xff] }
  0xf7   : > { %2043 = vmatpush1.bf16.msra.mxu0 %v2042_v27  ;;  %v2134_v27 = vpack.c.bf16 %v1220_v22, %v1216_v20  ;;  %v2152_v20 = vpack.c.bf16 %v1261_v11, %v1257_v10  ;;  %v1263_v22 = vld [vmem:[#allocation2 + $0xcc8] sm:$0xff] }
  0xf8   : > { %2115 = vmatpush1.bf16.msra.mxu1 %v2114_v28  ;;  %2045 = vmatprep.subr.bf16.mxu0 %v2044_v31  ;;  %v2064_v28 = vpack.c.bf16 %v1227_v24, %v1223_v23  ;;  %v1222_v31 = vld [vmem:[#allocation2 + $0xb80] sm:$0xff]  ;;  %v1267_v23 = vld [vmem:[#allocation2 + $0xce8] sm:$0xff]  ;;  %v1265_v24 = vld [vmem:[#allocation2 + $0xcd8] sm:$0xff] }
  0xf9   : > { %2117 = vmatprep.subr.bf16.mxu1 %v2116_v36  ;;  %v1228_v36 = vld [vmem:[#allocation2 + $0xbb0] sm:$0xff]  ;;  %v2066_v40 = vpack.c.bf16 %v1226_v32, %v1222_v31  ;;  %v1266_v31 = vld [vmem:[#allocation2 + $0xce0] sm:$0xff] }
  0xfa   : > { %v1264_v32 = vld [vmem:[#allocation2 + $0xcd0] sm:$0xff] }
  0xfb   : > { %2047 = vmatpush1.bf16.msra.mxu0 %v2046_v41  ;;  %v2138_v41 = vpack.c.bf16 %v1228_v36, %v1224_v33  ;;  %v2156_v33 = vpack.c.bf16 %v1269_v25, %v1265_v24  ;;  %v1271_v36 = vld [vmem:[#allocation2 + $0xd08] sm:$0xff] }
  0xfc   : > { %2119 = vmatpush1.bf16.msra.mxu1 %v2118_v43  ;;  %2049 = vmatprep.subr.bf16.mxu0 %v2048_v45  ;;  %v2068_v43 = vpack.c.bf16 %v1235_v38, %v1231_v37  ;;  %v1230_v45 = vld [vmem:[#allocation2 + $0xbc0] sm:$0xff]  ;;  %v1275_v37 = vld [vmem:[#allocation2 + $0xd28] sm:$0xff]  ;;  %v1273_v38 = vld [vmem:[#allocation2 + $0xd18] sm:$0xff] }
  0xfd   : > { %2121 = vmatprep.subr.bf16.mxu1 %v2120_v49  ;;  %v1236_v49 = vld [vmem:[#allocation2 + $0xbf0] sm:$0xff]  ;;  %v2070_v53 = vpack.c.bf16 %v1234_v46, %v1230_v45  ;;  %v1274_v45 = vld [vmem:[#allocation2 + $0xd20] sm:$0xff] }
  0xfe   : > { %v1272_v46 = vld [vmem:[#allocation2 + $0xd10] sm:$0xff] }
  0xff   : > { %2051 = vmatpush1.bf16.msra.mxu0 %v2050_v44  ;;  %v2142_v44 = vpack.c.bf16 %v1236_v49, %v1232_v47  ;;  %v2160_v47 = vpack.c.bf16 %v1277_v39, %v1273_v38  ;;  %v1279_v49 = vld [vmem:[#allocation2 + $0xd48] sm:$0xff] }
 0x100   : > { %2123 = vmatpush1.bf16.msra.mxu1 %v2122_v54  ;;  %2053 = vmatprep.subr.bf16.mxu0 %v2052_v55  ;;  %v2072_v54 = vpack.c.bf16 %v1243_v51, %v1239_v50  ;;  %v1238_v55 = vld [vmem:[#allocation2 + $0xc00] sm:$0xff]  ;;  %v1283_v50 = vld [vmem:[#allocation2 + $0xd68] sm:$0xff]  ;;  %v1281_v51 = vld [vmem:[#allocation2 + $0xd58] sm:$0xff] }
 0x101   : > { %2125 = vmatprep.subr.bf16.mxu1 %v2124_v59  ;;  %v1244_v59 = vld [vmem:[#allocation2 + $0xc30] sm:$0xff]  ;;  %v2074_v63 = vpack.c.bf16 %v1242_v56, %v1238_v55  ;;  %v1282_v55 = vld [vmem:[#allocation2 + $0xd60] sm:$0xff]  ;;  %v2164_v56 = vpack.c.bf16 %v1285_v52, %v1281_v51 }
 0x103   : > { %2055 = vmatpush1.bf16.msra.mxu0 %v2054_v1  ;;  %v2146_v1 = vpack.c.bf16 %v1244_v59, %v1240_v57  ;;  %v1280_v57 = vld [vmem:[#allocation2 + $0xd50] sm:$0xff] }
 0x104   : > { %2127 = vmatpush1.bf16.msra.mxu1 %v2126_v29  ;;  %2057 = vmatprep.subr.bf16.mxu0 %v2056_v2  ;;  %v2076_v29 = vpack.c.bf16 %v1251_v61, %v1247_v60  ;;  %v1246_v2 = vld [vmem:[#allocation2 + $0xc40] sm:$0xff] }
 0x105   : > { %2129 = vmatprep.subr.bf16.mxu1 %v2128_v7  ;;  %v1252_v7 = vld [vmem:[#allocation2 + $0xc70] sm:$0xff]  ;;  %v2078_v12 = vpack.c.bf16 %v1250_v3, %v1246_v2 }
 0x107   : > { %2059 = vmatpush1.bf16.msra.mxu0 %v2058_v13  ;;  %v2150_v13 = vpack.c.bf16 %v1252_v7, %v1248_v4 }
 0x108   : > { %2131 = vmatpush1.bf16.msra.mxu1 %v2130_v14  ;;  %2061 = vmatprep.subr.bf16.mxu0 %v2060_v17  ;;  %v2080_v14 = vpack.c.bf16 %v1259_v9, %v1255_v8  ;;  %v1254_v17 = vld [vmem:[#allocation2 + $0xc80] sm:$0xff] }
 0x109   : > { %2133 = vmatprep.subr.bf16.mxu1 %v2132_v21  ;;  %v1260_v21 = vld [vmem:[#allocation2 + $0xcb0] sm:$0xff]  ;;  %v2082_v42 = vpack.c.bf16 %v1258_v18, %v1254_v17 }
 0x10b   : > { %2063 = vmatpush1.bf16.msra.mxu0 %v2062_v26  ;;  %v2154_v26 = vpack.c.bf16 %v1260_v21, %v1256_v19 }
 0x10c   : > { %2135 = vmatpush1.bf16.msra.mxu1 %v2134_v27  ;;  %2065 = vmatprep.subr.bf16.mxu0 %v2064_v28  ;;  %v2084_v27 = vpack.c.bf16 %v1267_v23, %v1263_v22  ;;  %v1262_v28 = vld [vmem:[#allocation2 + $0xcc0] sm:$0xff] }
 0x10d   : > { %2137 = vmatprep.subr.bf16.mxu1 %v2136_v34  ;;  %v1268_v34 = vld [vmem:[#allocation2 + $0xcf0] sm:$0xff]  ;;  %v2086_v0 = vpack.c.bf16 %v1266_v31, %v1262_v28 }
 0x10f   : > { %2067 = vmatpush1.bf16.msra.mxu0 %v2066_v40  ;;  %v2158_v40 = vpack.c.bf16 %v1268_v34, %v1264_v32 }
 0x110   : > { %2139 = vmatpush1.bf16.msra.mxu1 %v2138_v41  ;;  %2069 = vmatprep.subr.bf16.mxu0 %v2068_v43  ;;  %v2088_v41 = vpack.c.bf16 %v1275_v37, %v1271_v36  ;;  %v1270_v43 = vld [vmem:[#allocation2 + $0xd00] sm:$0xff] }
 0x111   : > { %2141 = vmatprep.subr.bf16.mxu1 %v2140_v48  ;;  %v1276_v48 = vld [vmem:[#allocation2 + $0xd30] sm:$0xff]  ;;  %v2090_v16 = vpack.c.bf16 %v1274_v45, %v1270_v43 }
 0x113   : > { %2071 = vmatpush1.bf16.msra.mxu0 %v2070_v53  ;;  %v2162_v53 = vpack.c.bf16 %v1276_v48, %v1272_v46 }
 0x114   : > { %2143 = vmatpush1.bf16.msra.mxu1 %v2142_v44  ;;  %2073 = vmatprep.subr.bf16.mxu0 %v2072_v54  ;;  %v2092_v44 = vpack.c.bf16 %v1283_v50, %v1279_v49  ;;  %v1278_v54 = vld [vmem:[#allocation2 + $0xd40] sm:$0xff] }
 0x115   : > { %2145 = vmatprep.subr.bf16.mxu1 %v2144_v58  ;;  %v1284_v58 = vld [vmem:[#allocation2 + $0xd70] sm:$0xff]  ;;  %v2094_v59 = vpack.c.bf16 %v1282_v55, %v1278_v54 }
 0x116   : > { %v2166_v60 = vpack.c.bf16 %v1284_v58, %v1280_v57 }
 0x117   : > { %2075 = vmatpush1.bf16.msra.mxu0 %v2074_v63 }
 0x118   : > { %2147 = vmatpush1.bf16.msra.mxu1 %v2146_v1  ;;  %2077 = vmatprep.subr.bf16.mxu0 %v2076_v29 }
 0x119   : > { %2149 = vmatprep.subr.bf16.mxu1 %v2148_v5 }
 0x11b   : > { %2079 = vmatpush1.bf16.msra.mxu0 %v2078_v12 }
 0x11c   : > { %2151 = vmatpush1.bf16.msra.mxu1 %v2150_v13  ;;  %2081 = vmatprep.subr.bf16.mxu0 %v2080_v14 }
 0x11d   : > { %2153 = vmatprep.subr.bf16.mxu1 %v2152_v20 }
 0x11f   : > { %2083 = vmatpush1.bf16.msra.mxu0 %v2082_v42 }
 0x120   : > { %2155 = vmatpush1.bf16.msra.mxu1 %v2154_v26  ;;  %2085 = vmatprep.subr.bf16.mxu0 %v2084_v27 }
 0x121   : > { %2157 = vmatprep.subr.bf16.mxu1 %v2156_v33 }
 0x123   : > { %2087 = vmatpush1.bf16.msra.mxu0 %v2086_v0 }
 0x124   : > { %2159 = vmatpush1.bf16.msra.mxu1 %v2158_v40  ;;  %2089 = vmatprep.subr.bf16.mxu0 %v2088_v41 }
 0x125   : > { %2161 = vmatprep.subr.bf16.mxu1 %v2160_v47 }
 0x126   : > { %1365 = vmatmul.mubr.f32.vlgmr.msra.gmra.mrb[0].mxu0 %v2665_v6 }
 0x127   : > { %1507 = vmatmul.mubr.f32.vlgmr.msra.gmra.mrb[0].mxu1 %v2665_v6  ;;  %2091 = vmatpush1.bf16.msra.mxu0 %v2090_v16  ;;  %v233_v6 = vlaneseq }
 0x128   : > { %2163 = vmatpush1.bf16.msra.mxu1 %v2162_v53  ;;  %2093 = vmatprep.subr.bf16.mxu0 %v2092_v44 }
 0x129   : > { %2165 = vmatprep.subr.bf16.mxu1 %v2164_v56  ;;  %1435 = vmatprep.mubr.f32.mxu0 %v2453_v35  ;;  %v234_v61 = vshrl.u32 %v233_v6, 7 }
 0x12a   : > { %1577 = vmatprep.mubr.f32.mxu1 %v2453_v35 }
 0x12b   : > { %2095 = vmatpush1.bf16.msra.mxu0 %v2094_v59  ;;  %v235_v62 = vsub.s32 0, %v234_v61  ;;  %v243_v63 = vsub.s32 2, %v234_v61  ;;  %v239_v1 = vsub.s32 1, %v234_v61  ;;  %v247_v35 = vsub.s32 3, %v234_v61 }
 0x12c   : > { %2167 = vmatpush1.bf16.msra.mxu1 %v2166_v60 }
 0x12d   : > { %v236_v29 = vrot.slane %v231_v15, %v235_v62  ;;  %v244_v2 = vrot.slane %v231_v15, %v243_v63  ;;  %v240_v3 = vrot.slane %v231_v15, %v239_v1  ;;  %v248_v4 = vrot.slane %v231_v15, %v247_v35 }
 0x12e   : > { %1728 = vmatmul.mubr.msk.f32.vlgmr.msra.gmra.mrb[0].mxu0 %vm397_vm0, %v2674_v30 }
 0x12f   : > { %1729 = vmatmul.mubr.msk.f32.vlgmr.msra.gmra.mrb[0].mxu1 %vm397_vm0, %v2674_v30 }
 0x201   : > { %v1437_v5 = vpop.f32.mrb[0].mxu0 }
 0x202   : > { %v2168_v30 = vadd.f32 %v1437_v5, %v236_v29  ;;  %v1579_v7 = vpop.f32.mrb[0].mxu1  ;;  %v1439_v8 = vpop.f32.mrb[1].mxu0 }
 0x203   : > { %v2170_v9 = vadd.f32 %v1579_v7, %v244_v2  ;;  %v2169_v10 = vadd.f32 %v1439_v8, %v240_v3  ;;  %v1581_v11 = vpop.f32.mrb[1].mxu1 }
 0x204   : > { %1588 = vst [vmem:[%s215_s23] sm:$0xff] %v2168_v30  ;;  %v2171_v12 = vadd.f32 %v1581_v11, %v248_v4 }
 0x205   : > { %1590 = vst [vmem:[%s215_s23 + $0x10] sm:$0xff] %v2170_v9  ;;  %1589 = vst [vmem:[%s215_s23 + $0x8] sm:$0xff] %v2169_v10 }
 0x206   : > { %1591 = vst [vmem:[%s215_s23 + $0x18] sm:$0xff] %v2171_v12 }
 0x207   : > { %2358 = shalt.err (!%p2355_p9)
}
 0x208   : > { %s2359_s9 = scalar_lea.hbm %s2703_s18, 512  ;;  %s2363_s20 = scalar_lea.hbm %s2761_s3, 2048 }
 0x209   : > { %p2360_p11 = scmp.ne.s32.totalorder %s2703_s18, %s2359_s9  ;;  %p2364_p8 = scmp.lt.u32.totalorder %s2703_s18, %s2761_s3 }
 0x20a   : > { %p2365_p0 = scmp.lt.u32.totalorder %s2363_s20, %s2359_s9  ;;  %p2367_p10 = scmp.lt.u32.totalorder %s2359_s9, %s2703_s18 }
 0x20b   : > { %p2361_p13 = pnand %p2360_p11, %p2779_p12 }
 0x20c   : > { %p2366_p2 = por %p2365_p0, %p2364_p8 }
 0x20d   : > { %p2362_p3 = pneg %p2361_p13 }
 0x20e   : > { %p2368_p1 = por %p2367_p10, %p2366_p2 }
 0x210   : > { %p2369_p4 = pnand %p2368_p1, %p2362_p3 }
 0x212   : > { %2372 = shalt.err (!%p2369_p4)
}
 0x213   : > { %2202 = dma.vmem_to_hbm [thread:$0]  (%p2779_p12), %s2705_s29, 512, %s2703_s18, %s1593_s22  }
 0x214 PF: > { %p2219_p5 = scmp.ge.s32.totalorder %s2447_s19, 2  ;;  %s1621_s25 = sand.u32 1, %s2419_s12  }
 0x215   : > { %p2780_p6 = scmp.ne.s32.totalorder %s2773_s27, 0  ;;  %s1622_s28 = scalar_lea.sflag [#allocation4], %s1621_s25 }
 0x217   : > { %p2212_p7 = pnand %p2219_p5, %p2780_p6 }
 0x219   : > { %2414 = dma.done.wait (!%p2212_p7), %s1622_s28, 512  }
 0x21a   : > { %2416 = vsyncadd (!%p2212_p7), %s1622_s28, 4294966784  ;;  %s18_s19 = sadd.s32 1, %s2447_s19   ;;  %s2781_s16 = sld [smem:[#allocation11_spill]] }
 0x21b   : > { %p15_p9 = scmp.ge.s32.totalorder %s18_s19, 6   ;;  %s2782_s26 = sld [smem:[#allocation12_spill]] }
 0x21c   : > { %s2783_s18 = sld [smem:[#allocation13_spill]]  ;;  %s2784_s12 = smov %s2423_s13 }
 0x21d   : > { %s2785_s13 = smov %s2427_s14  ;;  %s2786_s14 = smov %s2554_s5 }
 0x21e   : > { %s2787_s15 = smov %s2439_s17  ;;  %17 = sbr.rel (!%p15_p9) target bundleno = 7 (0x7), region = 78 }
 0x221   : > { %s2788_s17 = smov %s2782_s26 }
 0x225   :  { %1627 = vsyncpa [#allocation3], 1 }
 0x226   :  { %1629 = vsyncpa [#allocation3 + $0x1], 1 }
 0x227   :  { %1630 = vsyncpa [#allocation6], 1 }
 0x228   :  { %1631 = vsyncpa [#allocation4], 1 }
 0x229   :  { %1633 = vsyncpa [#allocation4 + $0x1], 1 }

</bundles_post_ra>
